<compile_context>
chip_gen: v7x
topology: tpu7x:2x2x1
jax: 0.10.0
libtpu: 0.0.40
codegen_flags: <defaults>
</compile_context>

<pallas_src>
import functools

import jax
import jax.numpy as jnp
from jax import lax
from jax.experimental import pallas as pl
from jax.experimental.pallas import tpu as pltpu

_SUBLANE = 16     # bf16 sublane packing (covers f32's 8 too)
_LANE = 128       # lane width


def _round_up(x, m):
    return (x + m - 1) // m * m


def _vmem_budget_bytes():
    """Per-generation VMEM budget (leave ~25% headroom for the compiler)."""
    cap = None
    try:
        info = pltpu.get_tpu_info()
        cap = getattr(info, "vmem_capacity_bytes", None)
    except Exception:
        cap = None
    if not cap:
        cap = 64 * 1024 * 1024          # conservative: v7x per-TC VMEM
    return int(cap) * 3 // 4            # ~48 MiB on v7x, ~96 MiB on v5e/v6e


def _pick_t_tile(T, per_row_bytes, budget_bytes, fixed_bytes):
    """Largest time tile that fits the VMEM budget; nb=1 for short sequences;
    prefer an exact divisor of T (no masked tail) when one is close to the cap,
    otherwise pad T and mask the ragged tail inside the kernel."""
    cap = max(1, (budget_bytes - fixed_bytes) // max(1, per_row_bytes))
    cap = int(min(cap, 512))
    if cap >= T:
        return T
    for d in range(cap, 0, -1):
        if T % d == 0:
            if 2 * d >= cap:
                return d
            break
    return cap


def _pick_unroll(t_tile, b_pad, h):
    """Keep ~4 live (B_pad,2H) f32 temporaries per unrolled step within a small
    fraction of the 256 KiB vreg file."""
    bytes_per_step = 4 * b_pad * 2 * h * 4
    cap = max(1, (128 * 1024) // max(1, bytes_per_step))
    return int(max(1, min(t_tile, 8, cap)))


# ---------------------------------------------------------------------------
# Kernel 1: one fused bidirectional RNN layer (layers 0..n_layers-2)
# ---------------------------------------------------------------------------
# Activations are time-major and batch-flattened: row t*B_pad + b holds
# (timestep t, batch b).  The grid runs over time tiles; the fwd direction
# consumes tile i, the bwd direction consumes tile nb-1-i.  Outputs are two
# per-tile blocks (fwd half / bwd half), pipelined by BlockSpec.

def bidir_layer_kernel(x_f_ref, x_b_ref, w_if_ref, w_ib_ref, w_hh_ref,
                       b_ref, h0_ref, out_f_ref, out_b_ref,
                       xwf_ref, xwb_ref, h_ref,
                       *, t_tile, b_pad, hidden, t_valid, fuse_hh, mask_tail,
                       unroll):
    i = pl.program_id(0)
    H = hidden

    @pl.when(i == 0)
    def _init():
        h_ref[...] = h0_ref[...]          # [h0_fwd | h0_bwd]  (B_pad, 2H) bf16

    # Hoisted input projection for this tile (bias folded in): one well-shaped
    # MXU matmul per direction covering all t_tile timesteps.
    xwf_ref[...] = (jnp.dot(x_f_ref[...], w_if_ref[...],
                            preferred_element_type=jnp.float32) + b_ref[:, :H])
    xwb_ref[...] = (jnp.dot(x_b_ref[...], w_ib_ref[...],
                            preferred_element_type=jnp.float32) + b_ref[:, H:])

    if not fuse_hh:
        # Large H: split recurrence — zero off-diag blocks would waste MXU.
        w_hf = w_hh_ref[:H, :H]
        w_hb = w_hh_ref[H:, H:]
    if mask_tail:
        nb = pl.num_programs(0)

    def step(t, carry):
        h = h_ref[...]                                          # (B_pad,2H) bf16
        if fuse_hh:
            hh = jnp.dot(h, w_hh_ref[...], preferred_element_type=jnp.float32)
            hh_f, hh_b = hh[:, :H], hh[:, H:]
        else:
            hh_f = jnp.dot(h[:, :H], w_hf, preferred_element_type=jnp.float32)
            hh_b = jnp.dot(h[:, H:], w_hb, preferred_element_type=jnp.float32)
        rf = pl.multiple_of(t * b_pad, b_pad)                   # local fwd rows
        rb = pl.multiple_of((t_tile - 1 - t) * b_pad, b_pad)    # local bwd rows
        h_f = jnp.tanh(xwf_ref[pl.ds(rf, b_pad), :] + hh_f).astype(jnp.bfloat16)
        h_b = jnp.tanh(xwb_ref[pl.ds(rb, b_pad), :] + hh_b).astype(jnp.bfloat16)
        if mask_tail:
            # Padded (ragged-tail) timesteps: carry the hidden state through.
            gf_t = i * t_tile + t
            gb_t = (nb - 1 - i) * t_tile + (t_tile - 1 - t)
            h_f = jnp.where(gf_t < t_valid, h_f, h[:, :H])
            h_b = jnp.where(gb_t < t_valid, h_b, h[:, H:])
        out_f_ref[pl.ds(rf, b_pad), :] = h_f
        out_b_ref[pl.ds(rb, b_pad), :] = h_b
        h_ref[:, :H] = h_f
        h_ref[:, H:] = h_b
        return carry

    lax.fori_loop(0, t_tile, step, 0, unroll=unroll)


def _bidir_layer(x_flat, params, l, h0p, *, t_tile, nb, B_pad, H, t_valid,
                 vmem_limit):
    """x_flat: (T_pad*B_pad, D_in) bf16 time-major. Returns (T_pad*B_pad, 2H)."""
    D_in = x_flat.shape[-1]
    fuse_hh = (2 * H) <= 128
    w_if = jnp.asarray(params[f"w_ih_l{l}"].T, jnp.bfloat16)          # (D_in, H)
    w_ib = jnp.asarray(params[f"w_ih_l{l}_rev"].T, jnp.bfloat16)      # (D_in, H)
    w_hh = jnp.zeros((2 * H, 2 * H), jnp.float32)
    w_hh = w_hh.at[:H, :H].set(params[f"w_hh_l{l}"].T)
    w_hh = w_hh.at[H:, H:].set(params[f"w_hh_l{l}_rev"].T)
    w_hh = w_hh.astype(jnp.bfloat16)                                  # block-diag
    b = jnp.concatenate(
        [params[f"b_ih_l{l}"] + params[f"b_hh_l{l}"],
         params[f"b_ih_l{l}_rev"] + params[f"b_hh_l{l}_rev"]]
    ).reshape(1, 2 * H).astype(jnp.float32)
    h0 = jnp.concatenate([h0p[2 * l], h0p[2 * l + 1]],
                         axis=-1).astype(jnp.bfloat16)                # (B_pad,2H)

    rows = t_tile * B_pad
    T_pad = t_tile * nb
    mask_tail = (t_valid != T_pad)
    unroll = _pick_unroll(t_tile, B_pad, H)

    kernel = functools.partial(
        bidir_layer_kernel, t_tile=t_tile, b_pad=B_pad, hidden=H,
        t_valid=t_valid, fuse_hh=fuse_hh, mask_tail=mask_tail, unroll=unroll)

    out_f, out_b = pl.pallas_call(
        kernel,
        out_shape=(jax.ShapeDtypeStruct((T_pad * B_pad, H), jnp.bfloat16),
                   jax.ShapeDtypeStruct((T_pad * B_pad, H), jnp.bfloat16)),
        grid_spec=pltpu.PrefetchScalarGridSpec(
            num_scalar_prefetch=0,
            grid=(nb,),
            in_specs=[
                pl.BlockSpec((rows, D_in), lambda i: (i, 0)),           # x (fwd)
                pl.BlockSpec((rows, D_in), lambda i: (nb - 1 - i, 0)),  # x (bwd)
                pl.BlockSpec((D_in, H), lambda i: (0, 0)),              # W_ih fwd^T
                pl.BlockSpec((D_in, H), lambda i: (0, 0)),              # W_ih bwd^T
                pl.BlockSpec((2 * H, 2 * H), lambda i: (0, 0)),         # W_hh blkdiag
                pl.BlockSpec((1, 2 * H), lambda i: (0, 0)),             # bias
                pl.BlockSpec((B_pad, 2 * H), lambda i: (0, 0)),         # h0
            ],
            out_specs=[
                pl.BlockSpec((rows, H), lambda i: (i, 0)),              # fwd half
                pl.BlockSpec((rows, H), lambda i: (nb - 1 - i, 0)),     # bwd half
            ],
            scratch_shapes=[
                pltpu.VMEM((rows, H), jnp.float32),          # fwd input projection
                pltpu.VMEM((rows, H), jnp.float32),          # bwd input projection
                pltpu.VMEM((B_pad, 2 * H), jnp.bfloat16),    # hidden-state carry
            ],
        ),
        compiler_params=pltpu.CompilerParams(
            dimension_semantics=("arbitrary",),
            vmem_limit_bytes=vmem_limit,
        ),
    )(x_flat, x_flat, w_if, w_ib, w_hh, b, h0)
    # Concatenate the two halves once in XLA (cheap vs. keeping a resident slab).
    return jnp.concatenate([out_f, out_b], axis=-1)


# ---------------------------------------------------------------------------
# Kernel 2: specialized last RNN layer with the classifier fused in.
#   output[:, -1] only needs (a) the final forward hidden state and (b) ONE
#   backward step on the last real token, so only the logits are written out.
# ---------------------------------------------------------------------------

def final_layer_kernel(x_ref, w_if_ref, w_ib_ref, w_hf_ref, w_hb_ref,
                       b_ref, h0_ref, w_out_ref, b_out_ref, o_ref,
                       xwf_ref, hf_ref,
                       *, t_tile, b_pad, hidden, t_valid, last_local_t,
                       mask_tail, unroll):
    i = pl.program_id(0)
    nb = pl.num_programs(0)
    H = hidden

    @pl.when(i == 0)
    def _init():
        hf_ref[...] = h0_ref[:, :H]

    # Hoisted forward input projection for this tile (bias folded in).
    xwf_ref[...] = (jnp.dot(x_ref[...], w_if_ref[...],
                            preferred_element_type=jnp.float32) + b_ref[:, :H])

    def step(t, h):
        hh = jnp.dot(h, w_hf_ref[...], preferred_element_type=jnp.float32)
        r = pl.multiple_of(t * b_pad, b_pad)
        cand = jnp.tanh(xwf_ref[pl.ds(r, b_pad), :] + hh).astype(jnp.bfloat16)
        if mask_tail:
            cand = jnp.where(i * t_tile + t < t_valid, cand, h)
        return cand

    h_f = lax.fori_loop(0, t_tile, step, hf_ref[...], unroll=unroll)
    hf_ref[...] = h_f

    @pl.when(i == nb - 1)
    def _finish():
        # Backward direction: single step on the last REAL token (==
        # output[:, -1] of the reverse direction in PyTorch).
        x_last = x_ref[pl.ds(last_local_t * b_pad, b_pad), :]
        pre_b = (jnp.dot(x_last, w_ib_ref[...],
                         preferred_element_type=jnp.float32)
                 + jnp.dot(h0_ref[:, H:], w_hb_ref[...],
                           preferred_element_type=jnp.float32)
                 + b_ref[:, H:])
        h_b = jnp.tanh(pre_b).astype(jnp.bfloat16)
        # Fused classifier: logits = [h_f | h_b] @ W_out^T + b_out
        # (C padded to 128 lanes so the store is lane-dense).
        o_ref[...] = (jnp.dot(h_f, w_out_ref[:H, :],
                              preferred_element_type=jnp.float32)
                      + jnp.dot(h_b, w_out_ref[H:, :],
                                preferred_element_type=jnp.float32)
                      + b_out_ref[...])


def _final_layer(x_flat, params, l, h0p, lin_w, lin_b, *, t_tile, nb, B_pad,
                 H, t_valid, vmem_limit):
    """x_flat: (T_pad*B_pad, D_in) bf16. Returns (B_pad, C_pad) f32 logits."""
    D_in = x_flat.shape[-1]
    C = lin_w.shape[0]
    C_pad = _round_up(C, _LANE)
    w_if = jnp.asarray(params[f"w_ih_l{l}"].T, jnp.bfloat16)
    w_ib = jnp.asarray(params[f"w_ih_l{l}_rev"].T, jnp.bfloat16)
    w_hf = jnp.asarray(params[f"w_hh_l{l}"].T, jnp.bfloat16)
    w_hb = jnp.asarray(params[f"w_hh_l{l}_rev"].T, jnp.bfloat16)
    b = jnp.concatenate(
        [params[f"b_ih_l{l}"] + params[f"b_hh_l{l}"],
         params[f"b_ih_l{l}_rev"] + params[f"b_hh_l{l}_rev"]]
    ).reshape(1, 2 * H).astype(jnp.float32)
    h0 = jnp.concatenate([h0p[2 * l], h0p[2 * l + 1]],
                         axis=-1).astype(jnp.bfloat16)
    w_out = jnp.zeros((2 * H, C_pad), jnp.float32).at[:, :C].set(lin_w.T)
    w_out = w_out.astype(jnp.bfloat16)
    b_out = jnp.zeros((1, C_pad), jnp.float32).at[0, :C].set(lin_b)

    rows = t_tile * B_pad
    T_pad = t_tile * nb
    mask_tail = (t_valid != T_pad)
    last_local_t = (t_valid - 1) - (nb - 1) * t_tile   # last real token, in last tile
    unroll = _pick_unroll(t_tile, B_pad, H)

    kernel = functools.partial(
        final_layer_kernel, t_tile=t_tile, b_pad=B_pad, hidden=H,
        t_valid=t_valid, last_local_t=last_local_t, mask_tail=mask_tail,
        unroll=unroll)

    return pl.pallas_call(
        kernel,
        out_shape=jax.ShapeDtypeStruct((B_pad, C_pad), jnp.float32),
        grid_spec=pltpu.PrefetchScalarGridSpec(
            num_scalar_prefetch=0,
            grid=(nb,),
            in_specs=[
                pl.BlockSpec((rows, D_in), lambda i: (i, 0)),    # x tiles (time)
                pl.BlockSpec((D_in, H), lambda i: (0, 0)),       # W_ih fwd^T
                pl.BlockSpec((D_in, H), lambda i: (0, 0)),       # W_ih bwd^T
                pl.BlockSpec((H, H), lambda i: (0, 0)),          # W_hh fwd^T
                pl.BlockSpec((H, H), lambda i: (0, 0)),          # W_hh bwd^T
                pl.BlockSpec((1, 2 * H), lambda i: (0, 0)),      # bias
                pl.BlockSpec((B_pad, 2 * H), lambda i: (0, 0)),  # h0
                pl.BlockSpec((2 * H, C_pad), lambda i: (0, 0)),  # W_out (padded)
                pl.BlockSpec((1, C_pad), lambda i: (0, 0)),      # b_out (padded)
            ],
            out_specs=pl.BlockSpec((B_pad, C_pad), lambda i: (0, 0)),
            scratch_shapes=[
                pltpu.VMEM((rows, H), jnp.float32),      # fwd input projection
                pltpu.VMEM((B_pad, H), jnp.bfloat16),    # fwd hidden carry
            ],
        ),
        compiler_params=pltpu.CompilerParams(
            dimension_semantics=("arbitrary",),
            vmem_limit_bytes=vmem_limit,
        ),
    )(x_flat, w_if, w_ib, w_hf, w_hb, b, h0, w_out, b_out)


# ---------------------------------------------------------------------------
# Parameter init + forward
# ---------------------------------------------------------------------------

def init_params(key, vocablen, embed_len, hidden_dim, n_layers, n_classes):
    params = {}
    keys = iter(jax.random.split(key, 4 + 8 * n_layers))

    def nrm(shape, scale=0.1):
        return scale * jax.random.normal(next(keys), shape, dtype=jnp.float32)

    params["embedding"] = nrm((vocablen, embed_len), scale=1.0)
    for l in range(n_layers):
        d_in = embed_len if l == 0 else 2 * hidden_dim
        for suffix in ("", "_rev"):          # forward / backward direction
            params[f"w_ih_l{l}{suffix}"] = nrm((hidden_dim, d_in))
            params[f"w_hh_l{l}{suffix}"] = nrm((hidden_dim, hidden_dim))
            params[f"b_ih_l{l}{suffix}"] = nrm((hidden_dim,))
            params[f"b_hh_l{l}{suffix}"] = nrm((hidden_dim,))
    params["lin_w"] = nrm((n_classes, 2 * hidden_dim))
    params["lin_b"] = nrm((n_classes,))
    return params


def forward(params, X_batch, h0, *, n_layers, hidden_dim):
    """X_batch: (B, T) int32 token ids; h0: (2*n_layers, B, H) f32."""
    B, T = X_batch.shape
    H = hidden_dim
    E = params["embedding"].shape[1]
    B_pad = _round_up(B, _SUBLANE)
    C_pad = _round_up(params["lin_w"].shape[0], _LANE)

    # One VMEM-budgeted time tile shared by all layers (so T_pad is consistent).
    d_max = max(E, 2 * H) if n_layers > 1 else E
    per_row = B_pad * (8 * d_max + 16 * H)          # x streams + out blocks + proj
    fixed = 2 * (2 * d_max * H * 2 + (2 * H) * (2 * H) * 2
                 + 2 * H * C_pad * 2 + B_pad * 2 * H * 6) + (2 << 20)
    budget = _vmem_budget_bytes()
    t_tile = _pick_t_tile(T, per_row, budget, fixed)
    nb = -(-T // t_tile)                            # ceil: ragged tail is masked
    T_pad = nb * t_tile
    vmem_limit = budget

    # Pad batch to a sublane multiple and time to the tile grid; gather the
    # embedding directly in time-major, batch-flattened layout (no activation
    # transpose in XLA).  Padded rows/timesteps are masked / discarded.
    ids = jnp.zeros((T_pad, B_pad), X_batch.dtype).at[:T, :B].set(X_batch.T)
    x = jnp.take(params["embedding"], ids.reshape(-1), axis=0)   # (T_pad*B_pad, E)
    x = x.astype(jnp.bfloat16)

    h0p = jnp.zeros((2 * n_layers, B_pad, H), jnp.float32).at[:, :B].set(h0)

    for l in range(n_layers - 1):
        x = _bidir_layer(x, params, l, h0p, t_tile=t_tile, nb=nb, B_pad=B_pad,
                         H=H, t_valid=T, vmem_limit=vmem_limit)

    logits_pad = _final_layer(x, params, n_layers - 1, h0p,
                              params["lin_w"], params["lin_b"],
                              t_tile=t_tile, nb=nb, B_pad=B_pad, H=H,
                              t_valid=T, vmem_limit=vmem_limit)
    C = params["lin_w"].shape[0]
    return logits_pad[:B, :C]


# ---------------------------------------------------------------------------
# Demo
# ---------------------------------------------------------------------------

if __name__ == "__main__":
    VOCAB = 50
    EMBED_LEN = 16
    HIDDEN_DIM = 32
    N_LAYERS = 2
    N_CLASSES = 3
    BATCH = 2
    SEQ = 8

    key = jax.random.PRNGKey(0)
    k_param, k_tokens, k_h0 = jax.random.split(key, 3)

    params = init_params(k_param, VOCAB, EMBED_LEN, HIDDEN_DIM, N_LAYERS,
                         N_CLASSES)
    X_batch = jax.random.randint(k_tokens, (BATCH, SEQ), 0, VOCAB,
                                 dtype=jnp.int32)
    # torch.randn(2 * n_layers, len(X_batch), hidden_dim) equivalent:
    h0 = jax.random.normal(k_h0, (2 * N_LAYERS, BATCH, HIDDEN_DIM),
                           dtype=jnp.float32)

    fwd_fn = jax.jit(functools.partial(forward, n_layers=N_LAYERS,
                                       hidden_dim=HIDDEN_DIM))
    logits = fwd_fn(params, X_batch, h0)
    jax.block_until_ready(logits)

    assert logits.shape == (BATCH, N_CLASSES)
    assert logits.dtype == jnp.float32
    assert bool(jnp.all(jnp.isfinite(logits)))
    print("KERNEL_OK")
</pallas_src>

<mosaic_0001>
module attributes {stable_mosaic.version = 11 : i64} {
  func.func @bidir_layer_kernel(%arg0: i32, %arg1: memref<128x16xbf16, #tpu.memory_space<vmem>>, %arg2: memref<128x16xbf16, #tpu.memory_space<vmem>>, %arg3: memref<16x32xbf16, #tpu.memory_space<vmem>>, %arg4: memref<16x32xbf16, #tpu.memory_space<vmem>>, %arg5: memref<64x64xbf16, #tpu.memory_space<vmem>>, %arg6: memref<1x64xf32, #tpu.memory_space<vmem>>, %arg7: memref<16x64xbf16, #tpu.memory_space<vmem>>, %arg8: memref<128x32xbf16, #tpu.memory_space<vmem>>, %arg9: memref<128x32xbf16, #tpu.memory_space<vmem>>, %arg10: memref<128x32xf32, #tpu.memory_space<vmem>>, %arg11: memref<128x32xf32, #tpu.memory_space<vmem>>, %arg12: memref<16x64xbf16, #tpu.memory_space<vmem>>) attributes {dimension_semantics = [#tpu.dimension_semantics<arbitrary>], iteration_bounds = array<i64: 1>, scalar_prefetch = 0 : i64, scratch_operands = 3 : i64, tpu.core_type = #tpu.core_type<tc>, window_params = [{transform_indices = @transform_0, window_bounds = array<i64: 128, 16>}, {transform_indices = @transform_1, window_bounds = array<i64: 128, 16>}, {pipeline_mode = #tpu.pipeline_mode<synchronous>, transform_indices = @transform_2, window_bounds = array<i64: 16, 32>}, {pipeline_mode = #tpu.pipeline_mode<synchronous>, transform_indices = @transform_3, window_bounds = array<i64: 16, 32>}, {pipeline_mode = #tpu.pipeline_mode<synchronous>, transform_indices = @transform_4, window_bounds = array<i64: 64, 64>}, {pipeline_mode = #tpu.pipeline_mode<synchronous>, transform_indices = @transform_5, window_bounds = array<i64: 1, 64>}, {pipeline_mode = #tpu.pipeline_mode<synchronous>, transform_indices = @transform_6, window_bounds = array<i64: 16, 64>}, {transform_indices = @transform_7, window_bounds = array<i64: 128, 32>}, {transform_indices = @transform_8, window_bounds = array<i64: 128, 32>}]} {
    %c0_i32 = arith.constant 0 : i32
    %0 = arith.cmpi eq, %arg0, %c0_i32 : i32
    %1 = arith.extui %0 : i1 to i32
    %c0_i32_0 = arith.constant 0 : i32
    %2 = arith.cmpi ne, %1, %c0_i32_0 : i32
    scf.if %2 {
      %c0_144 = arith.constant 0 : index
      %c0_145 = arith.constant 0 : index
      %225 = vector.load %arg7[%c0_144, %c0_145] : memref<16x64xbf16, #tpu.memory_space<vmem>>, vector<16x64xbf16>
      %c0_146 = arith.constant 0 : index
      %c0_147 = arith.constant 0 : index
      %226 = vector.load %arg12[%c0_146, %c0_147] : memref<16x64xbf16, #tpu.memory_space<vmem>>, vector<16x64xbf16>
      tpu.vector_store %arg12[%c0_146, %c0_147], %225 {strides = array<i32>} : memref<16x64xbf16, #tpu.memory_space<vmem>>, vector<16x64xbf16>,
    } else {
    }
    %c0 = arith.constant 0 : index
    %c0_1 = arith.constant 0 : index
    %3 = vector.load %arg1[%c0, %c0_1] : memref<128x16xbf16, #tpu.memory_space<vmem>>, vector<128x16xbf16>
    %c0_2 = arith.constant 0 : index
    %c0_3 = arith.constant 0 : index
    %4 = vector.load %arg3[%c0_2, %c0_3] : memref<16x32xbf16, #tpu.memory_space<vmem>>, vector<16x32xbf16>
    %cst = arith.constant dense<0.000000e+00> : vector<128x32xf32>
    %5 = tpu.matmul %3, %4, %cst {dimension_numbers = #tpu.dot_dimension_numbers<[1], [0], [0], [1], [0, 0, 1, 1], [], []>} : vector<128x16xbf16>, vector<16x32xbf16>, vector<128x32xf32> -> vector<128x32xf32>
    %c0_4 = arith.constant 0 : index
    %c0_5 = arith.constant 0 : index
    %6 = vector.load %arg6[%c0_4, %c0_5] : memref<1x64xf32, #tpu.memory_space<vmem>>, vector<1x32xf32>
    %7 = vector.broadcast %6 : vector<1x32xf32> to vector<128x32xf32>
    %8 = arith.addf %5, %7 : vector<128x32xf32>
    %c0_6 = arith.constant 0 : index
    %c0_7 = arith.constant 0 : index
    %9 = vector.load %arg10[%c0_6, %c0_7] : memref<128x32xf32, #tpu.memory_space<vmem>>, vector<128x32xf32>
    tpu.vector_store %arg10[%c0_6, %c0_7], %8 {strides = array<i32>} : memref<128x32xf32, #tpu.memory_space<vmem>>, vector<128x32xf32>,
    %c0_8 = arith.constant 0 : index
    %c0_9 = arith.constant 0 : index
    %10 = vector.load %arg2[%c0_8, %c0_9] : memref<128x16xbf16, #tpu.memory_space<vmem>>, vector<128x16xbf16>
    %c0_10 = arith.constant 0 : index
    %c0_11 = arith.constant 0 : index
    %11 = vector.load %arg4[%c0_10, %c0_11] : memref<16x32xbf16, #tpu.memory_space<vmem>>, vector<16x32xbf16>
    %cst_12 = arith.constant dense<0.000000e+00> : vector<128x32xf32>
    %12 = tpu.matmul %10, %11, %cst_12 {dimension_numbers = #tpu.dot_dimension_numbers<[1], [0], [0], [1], [0, 0, 1, 1], [], []>} : vector<128x16xbf16>, vector<16x32xbf16>, vector<128x32xf32> -> vector<128x32xf32>
    %c0_13 = arith.constant 0 : index
    %c32 = arith.constant 32 : index
    %13 = vector.load %arg6[%c0_13, %c32] : memref<1x64xf32, #tpu.memory_space<vmem>>, vector<1x32xf32>
    %14 = vector.broadcast %13 : vector<1x32xf32> to vector<128x32xf32>
    %15 = arith.addf %12, %14 : vector<128x32xf32>
    %c0_14 = arith.constant 0 : index
    %c0_15 = arith.constant 0 : index
    %16 = vector.load %arg11[%c0_14, %c0_15] : memref<128x32xf32, #tpu.memory_space<vmem>>, vector<128x32xf32>
    tpu.vector_store %arg11[%c0_14, %c0_15], %15 {strides = array<i32>} : memref<128x32xf32, #tpu.memory_space<vmem>>, vector<128x32xf32>,
    %c0_i32_16 = arith.constant 0 : i32
    %c0_17 = arith.constant 0 : index
    %c0_18 = arith.constant 0 : index
    %17 = vector.load %arg12[%c0_17, %c0_18] : memref<16x64xbf16, #tpu.memory_space<vmem>>, vector<16x64xbf16>
    %c0_19 = arith.constant 0 : index
    %c0_20 = arith.constant 0 : index
    %18 = vector.load %arg5[%c0_19, %c0_20] : memref<64x64xbf16, #tpu.memory_space<vmem>>, vector<64x64xbf16>
    %cst_21 = arith.constant dense<0.000000e+00> : vector<16x64xf32>
    %19 = tpu.matmul %17, %18, %cst_21 {dimension_numbers = #tpu.dot_dimension_numbers<[1], [0], [0], [1], [0, 0, 1, 1], [], []>} : vector<16x64xbf16>, vector<64x64xbf16>, vector<16x64xf32> -> vector<16x64xf32>
    %20 = vector.extract_strided_slice %19 {offsets = [0, 0], sizes = [16, 32], strides = [1, 1]} : vector<16x64xf32> to vector<16x32xf32>
    %21 = vector.extract_strided_slice %19 {offsets = [0, 32], sizes = [16, 32], strides = [1, 1]} : vector<16x64xf32> to vector<16x32xf32>
    %c16_i32 = arith.constant 16 : i32
    %22 = arith.muli %c0_i32_16, %c16_i32 : i32
    %23 = tpu.assume_multiple %22, 16 : i32
    %c7_i32 = arith.constant 7 : i32
    %24 = arith.subi %c7_i32, %c0_i32_16 : i32
    %c16_i32_22 = arith.constant 16 : i32
    %25 = arith.muli %24, %c16_i32_22 : i32
    %26 = tpu.assume_multiple %25, 16 : i32
    %27 = arith.index_cast %23 : i32 to index
    %c0_23 = arith.constant 0 : index
    %28 = vector.load %arg10[%27, %c0_23] : memref<128x32xf32, #tpu.memory_space<vmem>>, vector<16x32xf32>
    %29 = arith.addf %28, %20 : vector<16x32xf32>
    %30 = math.tanh %29 : vector<16x32xf32>
    %31 = arith.truncf %30 : vector<16x32xf32> to vector<16x32xbf16>
    %32 = arith.index_cast %26 : i32 to index
    %c0_24 = arith.constant 0 : index
    %33 = vector.load %arg11[%32, %c0_24] : memref<128x32xf32, #tpu.memory_space<vmem>>, vector<16x32xf32>
    %34 = arith.addf %33, %21 : vector<16x32xf32>
    %35 = math.tanh %34 : vector<16x32xf32>
    %36 = arith.truncf %35 : vector<16x32xf32> to vector<16x32xbf16>
    %37 = arith.index_cast %23 : i32 to index
    %c0_25 = arith.constant 0 : index
    %38 = vector.load %arg8[%37, %c0_25] : memref<128x32xbf16, #tpu.memory_space<vmem>>, vector<16x32xbf16>
    tpu.vector_store %arg8[%37, %c0_25], %31 {strides = array<i32>} : memref<128x32xbf16, #tpu.memory_space<vmem>>, vector<16x32xbf16>,
    %39 = arith.index_cast %26 : i32 to index
    %c0_26 = arith.constant 0 : index
    %40 = vector.load %arg9[%39, %c0_26] : memref<128x32xbf16, #tpu.memory_space<vmem>>, vector<16x32xbf16>
    tpu.vector_store %arg9[%39, %c0_26], %36 {strides = array<i32>} : memref<128x32xbf16, #tpu.memory_space<vmem>>, vector<16x32xbf16>,
    %c0_27 = arith.constant 0 : index
    %c0_28 = arith.constant 0 : index
    %41 = vector.load %arg12[%c0_27, %c0_28] : memref<16x64xbf16, #tpu.memory_space<vmem>>, vector<16x32xbf16>
    tpu.vector_store %arg12[%c0_27, %c0_28], %31 {strides = array<i32>} : memref<16x64xbf16, #tpu.memory_space<vmem>>, vector<16x32xbf16>,
    %c0_29 = arith.constant 0 : index
    %c32_30 = arith.constant 32 : index
    %42 = vector.load %arg12[%c0_29, %c32_30] : memref<16x64xbf16, #tpu.memory_space<vmem>>, vector<16x32xbf16>
    tpu.vector_store %arg12[%c0_29, %c32_30], %36 {strides = array<i32>} : memref<16x64xbf16, #tpu.memory_space<vmem>>, vector<16x32xbf16>,
    %c1_i32 = arith.constant 1 : i32
    %c0_31 = arith.constant 0 : index
    %c0_32 = arith.constant 0 : index
    %43 = vector.load %arg12[%c0_31, %c0_32] : memref<16x64xbf16, #tpu.memory_space<vmem>>, vector<16x64xbf16>
    %c0_33 = arith.constant 0 : index
    %c0_34 = arith.constant 0 : index
    %44 = vector.load %arg5[%c0_33, %c0_34] : memref<64x64xbf16, #tpu.memory_space<vmem>>, vector<64x64xbf16>
    %cst_35 = arith.constant dense<0.000000e+00> : vector<16x64xf32>
    %45 = tpu.matmul %43, %44, %cst_35 {dimension_numbers = #tpu.dot_dimension_numbers<[1], [0], [0], [1], [0, 0, 1, 1], [], []>} : vector<16x64xbf16>, vector<64x64xbf16>, vector<16x64xf32> -> vector<16x64xf32>
    %46 = vector.extract_strided_slice %45 {offsets = [0, 0], sizes = [16, 32], strides = [1, 1]} : vector<16x64xf32> to vector<16x32xf32>
    %47 = vector.extract_strided_slice %45 {offsets = [0, 32], sizes = [16, 32], strides = [1, 1]} : vector<16x64xf32> to vector<16x32xf32>
    %c16_i32_36 = arith.constant 16 : i32
    %48 = arith.muli %c1_i32, %c16_i32_36 : i32
    %49 = tpu.assume_multiple %48, 16 : i32
    %c7_i32_37 = arith.constant 7 : i32
    %50 = arith.subi %c7_i32_37, %c1_i32 : i32
    %c16_i32_38 = arith.constant 16 : i32
    %51 = arith.muli %50, %c16_i32_38 : i32
    %52 = tpu.assume_multiple %51, 16 : i32
    %53 = arith.index_cast %49 : i32 to index
    %c0_39 = arith.constant 0 : index
    %54 = vector.load %arg10[%53, %c0_39] : memref<128x32xf32, #tpu.memory_space<vmem>>, vector<16x32xf32>
    %55 = arith.addf %54, %46 : vector<16x32xf32>
    %56 = math.tanh %55 : vector<16x32xf32>
    %57 = arith.truncf %56 : vector<16x32xf32> to vector<16x32xbf16>
    %58 = arith.index_cast %52 : i32 to index
    %c0_40 = arith.constant 0 : index
    %59 = vector.load %arg11[%58, %c0_40] : memref<128x32xf32, #tpu.memory_space<vmem>>, vector<16x32xf32>
    %60 = arith.addf %59, %47 : vector<16x32xf32>
    %61 = math.tanh %60 : vector<16x32xf32>
    %62 = arith.truncf %61 : vector<16x32xf32> to vector<16x32xbf16>
    %63 = arith.index_cast %49 : i32 to index
    %c0_41 = arith.constant 0 : index
    %64 = vector.load %arg8[%63, %c0_41] : memref<128x32xbf16, #tpu.memory_space<vmem>>, vector<16x32xbf16>
    tpu.vector_store %arg8[%63, %c0_41], %57 {strides = array<i32>} : memref<128x32xbf16, #tpu.memory_space<vmem>>, vector<16x32xbf16>,
    %65 = arith.index_cast %52 : i32 to index
    %c0_42 = arith.constant 0 : index
    %66 = vector.load %arg9[%65, %c0_42] : memref<128x32xbf16, #tpu.memory_space<vmem>>, vector<16x32xbf16>
    tpu.vector_store %arg9[%65, %c0_42], %62 {strides = array<i32>} : memref<128x32xbf16, #tpu.memory_space<vmem>>, vector<16x32xbf16>,
    %c0_43 = arith.constant 0 : index
    %c0_44 = arith.constant 0 : index
    %67 = vector.load %arg12[%c0_43, %c0_44] : memref<16x64xbf16, #tpu.memory_space<vmem>>, vector<16x32xbf16>
    tpu.vector_store %arg12[%c0_43, %c0_44], %57 {strides = array<i32>} : memref<16x64xbf16, #tpu.memory_space<vmem>>, vector<16x32xbf16>,
    %c0_45 = arith.constant 0 : index
    %c32_46 = arith.constant 32 : index
    %68 = vector.load %arg12[%c0_45, %c32_46] : memref<16x64xbf16, #tpu.memory_space<vmem>>, vector<16x32xbf16>
    tpu.vector_store %arg12[%c0_45, %c32_46], %62 {strides = array<i32>} : memref<16x64xbf16, #tpu.memory_space<vmem>>, vector<16x32xbf16>,
    %c2_i32 = arith.constant 2 : i32
    %c0_47 = arith.constant 0 : index
    %c0_48 = arith.constant 0 : index
    %69 = vector.load %arg12[%c0_47, %c0_48] : memref<16x64xbf16, #tpu.memory_space<vmem>>, vector<16x64xbf16>
    %c0_49 = arith.constant 0 : index
    %c0_50 = arith.constant 0 : index
    %70 = vector.load %arg5[%c0_49, %c0_50] : memref<64x64xbf16, #tpu.memory_space<vmem>>, vector<64x64xbf16>
    %cst_51 = arith.constant dense<0.000000e+00> : vector<16x64xf32>
    %71 = tpu.matmul %69, %70, %cst_51 {dimension_numbers = #tpu.dot_dimension_numbers<[1], [0], [0], [1], [0, 0, 1, 1], [], []>} : vector<16x64xbf16>, vector<64x64xbf16>, vector<16x64xf32> -> vector<16x64xf32>
    %72 = vector.extract_strided_slice %71 {offsets = [0, 0], sizes = [16, 32], strides = [1, 1]} : vector<16x64xf32> to vector<16x32xf32>
    %73 = vector.extract_strided_slice %71 {offsets = [0, 32], sizes = [16, 32], strides = [1, 1]} : vector<16x64xf32> to vector<16x32xf32>
    %c16_i32_52 = arith.constant 16 : i32
    %74 = arith.muli %c2_i32, %c16_i32_52 : i32
    %75 = tpu.assume_multiple %74, 16 : i32
    %c7_i32_53 = arith.constant 7 : i32
    %76 = arith.subi %c7_i32_53, %c2_i32 : i32
    %c16_i32_54 = arith.constant 16 : i32
    %77 = arith.muli %76, %c16_i32_54 : i32
    %78 = tpu.assume_multiple %77, 16 : i32
    %79 = arith.index_cast %75 : i32 to index
    %c0_55 = arith.constant 0 : index
    %80 = vector.load %arg10[%79, %c0_55] : memref<128x32xf32, #tpu.memory_space<vmem>>, vector<16x32xf32>
    %81 = arith.addf %80, %72 : vector<16x32xf32>
    %82 = math.tanh %81 : vector<16x32xf32>
    %83 = arith.truncf %82 : vector<16x32xf32> to vector<16x32xbf16>
    %84 = arith.index_cast %78 : i32 to index
    %c0_56 = arith.constant 0 : index
    %85 = vector.load %arg11[%84, %c0_56] : memref<128x32xf32, #tpu.memory_space<vmem>>, vector<16x32xf32>
    %86 = arith.addf %85, %73 : vector<16x32xf32>
    %87 = math.tanh %86 : vector<16x32xf32>
    %88 = arith.truncf %87 : vector<16x32xf32> to vector<16x32xbf16>
    %89 = arith.index_cast %75 : i32 to index
    %c0_57 = arith.constant 0 : index
    %90 = vector.load %arg8[%89, %c0_57] : memref<128x32xbf16, #tpu.memory_space<vmem>>, vector<16x32xbf16>
    tpu.vector_store %arg8[%89, %c0_57], %83 {strides = array<i32>} : memref<128x32xbf16, #tpu.memory_space<vmem>>, vector<16x32xbf16>,
    %91 = arith.index_cast %78 : i32 to index
    %c0_58 = arith.constant 0 : index
    %92 = vector.load %arg9[%91, %c0_58] : memref<128x32xbf16, #tpu.memory_space<vmem>>, vector<16x32xbf16>
    tpu.vector_store %arg9[%91, %c0_58], %88 {strides = array<i32>} : memref<128x32xbf16, #tpu.memory_space<vmem>>, vector<16x32xbf16>,
    %c0_59 = arith.constant 0 : index
    %c0_60 = arith.constant 0 : index
    %93 = vector.load %arg12[%c0_59, %c0_60] : memref<16x64xbf16, #tpu.memory_space<vmem>>, vector<16x32xbf16>
    tpu.vector_store %arg12[%c0_59, %c0_60], %83 {strides = array<i32>} : memref<16x64xbf16, #tpu.memory_space<vmem>>, vector<16x32xbf16>,
    %c0_61 = arith.constant 0 : index
    %c32_62 = arith.constant 32 : index
    %94 = vector.load %arg12[%c0_61, %c32_62] : memref<16x64xbf16, #tpu.memory_space<vmem>>, vector<16x32xbf16>
    tpu.vector_store %arg12[%c0_61, %c32_62], %88 {strides = array<i32>} : memref<16x64xbf16, #tpu.memory_space<vmem>>, vector<16x32xbf16>,
    %c3_i32 = arith.constant 3 : i32
    %c0_63 = arith.constant 0 : index
    %c0_64 = arith.constant 0 : index
    %95 = vector.load %arg12[%c0_63, %c0_64] : memref<16x64xbf16, #tpu.memory_space<vmem>>, vector<16x64xbf16>
    %c0_65 = arith.constant 0 : index
    %c0_66 = arith.constant 0 : index
    %96 = vector.load %arg5[%c0_65, %c0_66] : memref<64x64xbf16, #tpu.memory_space<vmem>>, vector<64x64xbf16>
    %cst_67 = arith.constant dense<0.000000e+00> : vector<16x64xf32>
    %97 = tpu.matmul %95, %96, %cst_67 {dimension_numbers = #tpu.dot_dimension_numbers<[1], [0], [0], [1], [0, 0, 1, 1], [], []>} : vector<16x64xbf16>, vector<64x64xbf16>, vector<16x64xf32> -> vector<16x64xf32>
    %98 = vector.extract_strided_slice %97 {offsets = [0, 0], sizes = [16, 32], strides = [1, 1]} : vector<16x64xf32> to vector<16x32xf32>
    %99 = vector.extract_strided_slice %97 {offsets = [0, 32], sizes = [16, 32], strides = [1, 1]} : vector<16x64xf32> to vector<16x32xf32>
    %c16_i32_68 = arith.constant 16 : i32
    %100 = arith.muli %c3_i32, %c16_i32_68 : i32
    %101 = tpu.assume_multiple %100, 16 : i32
    %c7_i32_69 = arith.constant 7 : i32
    %102 = arith.subi %c7_i32_69, %c3_i32 : i32
    %c16_i32_70 = arith.constant 16 : i32
    %103 = arith.muli %102, %c16_i32_70 : i32
    %104 = tpu.assume_multiple %103, 16 : i32
    %105 = arith.index_cast %101 : i32 to index
    %c0_71 = arith.constant 0 : index
    %106 = vector.load %arg10[%105, %c0_71] : memref<128x32xf32, #tpu.memory_space<vmem>>, vector<16x32xf32>
    %107 = arith.addf %106, %98 : vector<16x32xf32>
    %108 = math.tanh %107 : vector<16x32xf32>
    %109 = arith.truncf %108 : vector<16x32xf32> to vector<16x32xbf16>
    %110 = arith.index_cast %104 : i32 to index
    %c0_72 = arith.constant 0 : index
    %111 = vector.load %arg11[%110, %c0_72] : memref<128x32xf32, #tpu.memory_space<vmem>>, vector<16x32xf32>
    %112 = arith.addf %111, %99 : vector<16x32xf32>
    %113 = math.tanh %112 : vector<16x32xf32>
    %114 = arith.truncf %113 : vector<16x32xf32> to vector<16x32xbf16>
    %115 = arith.index_cast %101 : i32 to index
    %c0_73 = arith.constant 0 : index
    %116 = vector.load %arg8[%115, %c0_73] : memref<128x32xbf16, #tpu.memory_space<vmem>>, vector<16x32xbf16>
    tpu.vector_store %arg8[%115, %c0_73], %109 {strides = array<i32>} : memref<128x32xbf16, #tpu.memory_space<vmem>>, vector<16x32xbf16>,
    %117 = arith.index_cast %104 : i32 to index
    %c0_74 = arith.constant 0 : index
    %118 = vector.load %arg9[%117, %c0_74] : memref<128x32xbf16, #tpu.memory_space<vmem>>, vector<16x32xbf16>
    tpu.vector_store %arg9[%117, %c0_74], %114 {strides = array<i32>} : memref<128x32xbf16, #tpu.memory_space<vmem>>, vector<16x32xbf16>,
    %c0_75 = arith.constant 0 : index
    %c0_76 = arith.constant 0 : index
    %119 = vector.load %arg12[%c0_75, %c0_76] : memref<16x64xbf16, #tpu.memory_space<vmem>>, vector<16x32xbf16>
    tpu.vector_store %arg12[%c0_75, %c0_76], %109 {strides = array<i32>} : memref<16x64xbf16, #tpu.memory_space<vmem>>, vector<16x32xbf16>,
    %c0_77 = arith.constant 0 : index
    %c32_78 = arith.constant 32 : index
    %120 = vector.load %arg12[%c0_77, %c32_78] : memref<16x64xbf16, #tpu.memory_space<vmem>>, vector<16x32xbf16>
    tpu.vector_store %arg12[%c0_77, %c32_78], %114 {strides = array<i32>} : memref<16x64xbf16, #tpu.memory_space<vmem>>, vector<16x32xbf16>,
    %c4_i32 = arith.constant 4 : i32
    %c0_79 = arith.constant 0 : index
    %c0_80 = arith.constant 0 : index
    %121 = vector.load %arg12[%c0_79, %c0_80] : memref<16x64xbf16, #tpu.memory_space<vmem>>, vector<16x64xbf16>
    %c0_81 = arith.constant 0 : index
    %c0_82 = arith.constant 0 : index
    %122 = vector.load %arg5[%c0_81, %c0_82] : memref<64x64xbf16, #tpu.memory_space<vmem>>, vector<64x64xbf16>
    %cst_83 = arith.constant dense<0.000000e+00> : vector<16x64xf32>
    %123 = tpu.matmul %121, %122, %cst_83 {dimension_numbers = #tpu.dot_dimension_numbers<[1], [0], [0], [1], [0, 0, 1, 1], [], []>} : vector<16x64xbf16>, vector<64x64xbf16>, vector<16x64xf32> -> vector<16x64xf32>
    %124 = vector.extract_strided_slice %123 {offsets = [0, 0], sizes = [16, 32], strides = [1, 1]} : vector<16x64xf32> to vector<16x32xf32>
    %125 = vector.extract_strided_slice %123 {offsets = [0, 32], sizes = [16, 32], strides = [1, 1]} : vector<16x64xf32> to vector<16x32xf32>
    %c16_i32_84 = arith.constant 16 : i32
    %126 = arith.muli %c4_i32, %c16_i32_84 : i32
    %127 = tpu.assume_multiple %126, 16 : i32
    %c7_i32_85 = arith.constant 7 : i32
    %128 = arith.subi %c7_i32_85, %c4_i32 : i32
    %c16_i32_86 = arith.constant 16 : i32
    %129 = arith.muli %128, %c16_i32_86 : i32
    %130 = tpu.assume_multiple %129, 16 : i32
    %131 = arith.index_cast %127 : i32 to index
    %c0_87 = arith.constant 0 : index
    %132 = vector.load %arg10[%131, %c0_87] : memref<128x32xf32, #tpu.memory_space<vmem>>, vector<16x32xf32>
    %133 = arith.addf %132, %124 : vector<16x32xf32>
    %134 = math.tanh %133 : vector<16x32xf32>
    %135 = arith.truncf %134 : vector<16x32xf32> to vector<16x32xbf16>
    %136 = arith.index_cast %130 : i32 to index
    %c0_88 = arith.constant 0 : index
    %137 = vector.load %arg11[%136, %c0_88] : memref<128x32xf32, #tpu.memory_space<vmem>>, vector<16x32xf32>
    %138 = arith.addf %137, %125 : vector<16x32xf32>
    %139 = math.tanh %138 : vector<16x32xf32>
    %140 = arith.truncf %139 : vector<16x32xf32> to vector<16x32xbf16>
    %141 = arith.index_cast %127 : i32 to index
    %c0_89 = arith.constant 0 : index
    %142 = vector.load %arg8[%141, %c0_89] : memref<128x32xbf16, #tpu.memory_space<vmem>>, vector<16x32xbf16>
    tpu.vector_store %arg8[%141, %c0_89], %135 {strides = array<i32>} : memref<128x32xbf16, #tpu.memory_space<vmem>>, vector<16x32xbf16>,
    %143 = arith.index_cast %130 : i32 to index
    %c0_90 = arith.constant 0 : index
    %144 = vector.load %arg9[%143, %c0_90] : memref<128x32xbf16, #tpu.memory_space<vmem>>, vector<16x32xbf16>
    tpu.vector_store %arg9[%143, %c0_90], %140 {strides = array<i32>} : memref<128x32xbf16, #tpu.memory_space<vmem>>, vector<16x32xbf16>,
    %c0_91 = arith.constant 0 : index
    %c0_92 = arith.constant 0 : index
    %145 = vector.load %arg12[%c0_91, %c0_92] : memref<16x64xbf16, #tpu.memory_space<vmem>>, vector<16x32xbf16>
    tpu.vector_store %arg12[%c0_91, %c0_92], %135 {strides = array<i32>} : memref<16x64xbf16, #tpu.memory_space<vmem>>, vector<16x32xbf16>,
    %c0_93 = arith.constant 0 : index
    %c32_94 = arith.constant 32 : index
    %146 = vector.load %arg12[%c0_93, %c32_94] : memref<16x64xbf16, #tpu.memory_space<vmem>>, vector<16x32xbf16>
    tpu.vector_store %arg12[%c0_93, %c32_94], %140 {strides = array<i32>} : memref<16x64xbf16, #tpu.memory_space<vmem>>, vector<16x32xbf16>,
    %c5_i32 = arith.constant 5 : i32
    %c0_95 = arith.constant 0 : index
    %c0_96 = arith.constant 0 : index
    %147 = vector.load %arg12[%c0_95, %c0_96] : memref<16x64xbf16, #tpu.memory_space<vmem>>, vector<16x64xbf16>
    %c0_97 = arith.constant 0 : index
    %c0_98 = arith.constant 0 : index
    %148 = vector.load %arg5[%c0_97, %c0_98] : memref<64x64xbf16, #tpu.memory_space<vmem>>, vector<64x64xbf16>
    %cst_99 = arith.constant dense<0.000000e+00> : vector<16x64xf32>
    %149 = tpu.matmul %147, %148, %cst_99 {dimension_numbers = #tpu.dot_dimension_numbers<[1], [0], [0], [1], [0, 0, 1, 1], [], []>} : vector<16x64xbf16>, vector<64x64xbf16>, vector<16x64xf32> -> vector<16x64xf32>
    %150 = vector.extract_strided_slice %149 {offsets = [0, 0], sizes = [16, 32], strides = [1, 1]} : vector<16x64xf32> to vector<16x32xf32>
    %151 = vector.extract_strided_slice %149 {offsets = [0, 32], sizes = [16, 32], strides = [1, 1]} : vector<16x64xf32> to vector<16x32xf32>
    %c16_i32_100 = arith.constant 16 : i32
    %152 = arith.muli %c5_i32, %c16_i32_100 : i32
    %153 = tpu.assume_multiple %152, 16 : i32
    %c7_i32_101 = arith.constant 7 : i32
    %154 = arith.subi %c7_i32_101, %c5_i32 : i32
    %c16_i32_102 = arith.constant 16 : i32
    %155 = arith.muli %154, %c16_i32_102 : i32
    %156 = tpu.assume_multiple %155, 16 : i32
    %157 = arith.index_cast %153 : i32 to index
    %c0_103 = arith.constant 0 : index
    %158 = vector.load %arg10[%157, %c0_103] : memref<128x32xf32, #tpu.memory_space<vmem>>, vector<16x32xf32>
    %159 = arith.addf %158, %150 : vector<16x32xf32>
    %160 = math.tanh %159 : vector<16x32xf32>
    %161 = arith.truncf %160 : vector<16x32xf32> to vector<16x32xbf16>
    %162 = arith.index_cast %156 : i32 to index
    %c0_104 = arith.constant 0 : index
    %163 = vector.load %arg11[%162, %c0_104] : memref<128x32xf32, #tpu.memory_space<vmem>>, vector<16x32xf32>
    %164 = arith.addf %163, %151 : vector<16x32xf32>
    %165 = math.tanh %164 : vector<16x32xf32>
    %166 = arith.truncf %165 : vector<16x32xf32> to vector<16x32xbf16>
    %167 = arith.index_cast %153 : i32 to index
    %c0_105 = arith.constant 0 : index
    %168 = vector.load %arg8[%167, %c0_105] : memref<128x32xbf16, #tpu.memory_space<vmem>>, vector<16x32xbf16>
    tpu.vector_store %arg8[%167, %c0_105], %161 {strides = array<i32>} : memref<128x32xbf16, #tpu.memory_space<vmem>>, vector<16x32xbf16>,
    %169 = arith.index_cast %156 : i32 to index
    %c0_106 = arith.constant 0 : index
    %170 = vector.load %arg9[%169, %c0_106] : memref<128x32xbf16, #tpu.memory_space<vmem>>, vector<16x32xbf16>
    tpu.vector_store %arg9[%169, %c0_106], %166 {strides = array<i32>} : memref<128x32xbf16, #tpu.memory_space<vmem>>, vector<16x32xbf16>,
    %c0_107 = arith.constant 0 : index
    %c0_108 = arith.constant 0 : index
    %171 = vector.load %arg12[%c0_107, %c0_108] : memref<16x64xbf16, #tpu.memory_space<vmem>>, vector<16x32xbf16>
    tpu.vector_store %arg12[%c0_107, %c0_108], %161 {strides = array<i32>} : memref<16x64xbf16, #tpu.memory_space<vmem>>, vector<16x32xbf16>,
    %c0_109 = arith.constant 0 : index
    %c32_110 = arith.constant 32 : index
    %172 = vector.load %arg12[%c0_109, %c32_110] : memref<16x64xbf16, #tpu.memory_space<vmem>>, vector<16x32xbf16>
    tpu.vector_store %arg12[%c0_109, %c32_110], %166 {strides = array<i32>} : memref<16x64xbf16, #tpu.memory_space<vmem>>, vector<16x32xbf16>,
    %c6_i32 = arith.constant 6 : i32
    %c0_111 = arith.constant 0 : index
    %c0_112 = arith.constant 0 : index
    %173 = vector.load %arg12[%c0_111, %c0_112] : memref<16x64xbf16, #tpu.memory_space<vmem>>, vector<16x64xbf16>
    %c0_113 = arith.constant 0 : index
    %c0_114 = arith.constant 0 : index
    %174 = vector.load %arg5[%c0_113, %c0_114] : memref<64x64xbf16, #tpu.memory_space<vmem>>, vector<64x64xbf16>
    %cst_115 = arith.constant dense<0.000000e+00> : vector<16x64xf32>
    %175 = tpu.matmul %173, %174, %cst_115 {dimension_numbers = #tpu.dot_dimension_numbers<[1], [0], [0], [1], [0, 0, 1, 1], [], []>} : vector<16x64xbf16>, vector<64x64xbf16>, vector<16x64xf32> -> vector<16x64xf32>
    %176 = vector.extract_strided_slice %175 {offsets = [0, 0], sizes = [16, 32], strides = [1, 1]} : vector<16x64xf32> to vector<16x32xf32>
    %177 = vector.extract_strided_slice %175 {offsets = [0, 32], sizes = [16, 32], strides = [1, 1]} : vector<16x64xf32> to vector<16x32xf32>
    %c16_i32_116 = arith.constant 16 : i32
    %178 = arith.muli %c6_i32, %c16_i32_116 : i32
    %179 = tpu.assume_multiple %178, 16 : i32
    %c7_i32_117 = arith.constant 7 : i32
    %180 = arith.subi %c7_i32_117, %c6_i32 : i32
    %c16_i32_118 = arith.constant 16 : i32
    %181 = arith.muli %180, %c16_i32_118 : i32
    %182 = tpu.assume_multiple %181, 16 : i32
    %183 = arith.index_cast %179 : i32 to index
    %c0_119 = arith.constant 0 : index
    %184 = vector.load %arg10[%183, %c0_119] : memref<128x32xf32, #tpu.memory_space<vmem>>, vector<16x32xf32>
    %185 = arith.addf %184, %176 : vector<16x32xf32>
    %186 = math.tanh %185 : vector<16x32xf32>
    %187 = arith.truncf %186 : vector<16x32xf32> to vector<16x32xbf16>
    %188 = arith.index_cast %182 : i32 to index
    %c0_120 = arith.constant 0 : index
    %189 = vector.load %arg11[%188, %c0_120] : memref<128x32xf32, #tpu.memory_space<vmem>>, vector<16x32xf32>
    %190 = arith.addf %189, %177 : vector<16x32xf32>
    %191 = math.tanh %190 : vector<16x32xf32>
    %192 = arith.truncf %191 : vector<16x32xf32> to vector<16x32xbf16>
    %193 = arith.index_cast %179 : i32 to index
    %c0_121 = arith.constant 0 : index
    %194 = vector.load %arg8[%193, %c0_121] : memref<128x32xbf16, #tpu.memory_space<vmem>>, vector<16x32xbf16>
    tpu.vector_store %arg8[%193, %c0_121], %187 {strides = array<i32>} : memref<128x32xbf16, #tpu.memory_space<vmem>>, vector<16x32xbf16>,
    %195 = arith.index_cast %182 : i32 to index
    %c0_122 = arith.constant 0 : index
    %196 = vector.load %arg9[%195, %c0_122] : memref<128x32xbf16, #tpu.memory_space<vmem>>, vector<16x32xbf16>
    tpu.vector_store %arg9[%195, %c0_122], %192 {strides = array<i32>} : memref<128x32xbf16, #tpu.memory_space<vmem>>, vector<16x32xbf16>,
    %c0_123 = arith.constant 0 : index
    %c0_124 = arith.constant 0 : index
    %197 = vector.load %arg12[%c0_123, %c0_124] : memref<16x64xbf16, #tpu.memory_space<vmem>>, vector<16x32xbf16>
    tpu.vector_store %arg12[%c0_123, %c0_124], %187 {strides = array<i32>} : memref<16x64xbf16, #tpu.memory_space<vmem>>, vector<16x32xbf16>,
    %c0_125 = arith.constant 0 : index
    %c32_126 = arith.constant 32 : index
    %198 = vector.load %arg12[%c0_125, %c32_126] : memref<16x64xbf16, #tpu.memory_space<vmem>>, vector<16x32xbf16>
    tpu.vector_store %arg12[%c0_125, %c32_126], %192 {strides = array<i32>} : memref<16x64xbf16, #tpu.memory_space<vmem>>, vector<16x32xbf16>,
    %c7_i32_127 = arith.constant 7 : i32
    %c0_128 = arith.constant 0 : index
    %c0_129 = arith.constant 0 : index
    %199 = vector.load %arg12[%c0_128, %c0_129] : memref<16x64xbf16, #tpu.memory_space<vmem>>, vector<16x64xbf16>
    %c0_130 = arith.constant 0 : index
    %c0_131 = arith.constant 0 : index
    %200 = vector.load %arg5[%c0_130, %c0_131] : memref<64x64xbf16, #tpu.memory_space<vmem>>, vector<64x64xbf16>
    %cst_132 = arith.constant dense<0.000000e+00> : vector<16x64xf32>
    %201 = tpu.matmul %199, %200, %cst_132 {dimension_numbers = #tpu.dot_dimension_numbers<[1], [0], [0], [1], [0, 0, 1, 1], [], []>} : vector<16x64xbf16>, vector<64x64xbf16>, vector<16x64xf32> -> vector<16x64xf32>
    %202 = vector.extract_strided_slice %201 {offsets = [0, 0], sizes = [16, 32], strides = [1, 1]} : vector<16x64xf32> to vector<16x32xf32>
    %203 = vector.extract_strided_slice %201 {offsets = [0, 32], sizes = [16, 32], strides = [1, 1]} : vector<16x64xf32> to vector<16x32xf32>
    %c16_i32_133 = arith.constant 16 : i32
    %204 = arith.muli %c7_i32_127, %c16_i32_133 : i32
    %205 = tpu.assume_multiple %204, 16 : i32
    %c7_i32_134 = arith.constant 7 : i32
    %206 = arith.subi %c7_i32_134, %c7_i32_127 : i32
    %c16_i32_135 = arith.constant 16 : i32
    %207 = arith.muli %206, %c16_i32_135 : i32
    %208 = tpu.assume_multiple %207, 16 : i32
    %209 = arith.index_cast %205 : i32 to index
    %c0_136 = arith.constant 0 : index
    %210 = vector.load %arg10[%209, %c0_136] : memref<128x32xf32, #tpu.memory_space<vmem>>, vector<16x32xf32>
    %211 = arith.addf %210, %202 : vector<16x32xf32>
    %212 = math.tanh %211 : vector<16x32xf32>
    %213 = arith.truncf %212 : vector<16x32xf32> to vector<16x32xbf16>
    %214 = arith.index_cast %208 : i32 to index
    %c0_137 = arith.constant 0 : index
    %215 = vector.load %arg11[%214, %c0_137] : memref<128x32xf32, #tpu.memory_space<vmem>>, vector<16x32xf32>
    %216 = arith.addf %215, %203 : vector<16x32xf32>
    %217 = math.tanh %216 : vector<16x32xf32>
    %218 = arith.truncf %217 : vector<16x32xf32> to vector<16x32xbf16>
    %219 = arith.index_cast %205 : i32 to index
    %c0_138 = arith.constant 0 : index
    %220 = vector.load %arg8[%219, %c0_138] : memref<128x32xbf16, #tpu.memory_space<vmem>>, vector<16x32xbf16>
    tpu.vector_store %arg8[%219, %c0_138], %213 {strides = array<i32>} : memref<128x32xbf16, #tpu.memory_space<vmem>>, vector<16x32xbf16>,
    %221 = arith.index_cast %208 : i32 to index
    %c0_139 = arith.constant 0 : index
    %222 = vector.load %arg9[%221, %c0_139] : memref<128x32xbf16, #tpu.memory_space<vmem>>, vector<16x32xbf16>
    tpu.vector_store %arg9[%221, %c0_139], %218 {strides = array<i32>} : memref<128x32xbf16, #tpu.memory_space<vmem>>, vector<16x32xbf16>,
    %c0_140 = arith.constant 0 : index
    %c0_141 = arith.constant 0 : index
    %223 = vector.load %arg12[%c0_140, %c0_141] : memref<16x64xbf16, #tpu.memory_space<vmem>>, vector<16x32xbf16>
    tpu.vector_store %arg12[%c0_140, %c0_141], %213 {strides = array<i32>} : memref<16x64xbf16, #tpu.memory_space<vmem>>, vector<16x32xbf16>,
    %c0_142 = arith.constant 0 : index
    %c32_143 = arith.constant 32 : index
    %224 = vector.load %arg12[%c0_142, %c32_143] : memref<16x64xbf16, #tpu.memory_space<vmem>>, vector<16x32xbf16>
    tpu.vector_store %arg12[%c0_142, %c32_143], %218 {strides = array<i32>} : memref<16x64xbf16, #tpu.memory_space<vmem>>, vector<16x32xbf16>,
    %c8_i32 = arith.constant 8 : i32
    return
  }
  func.func @transform_0(%arg0: i32) -> (i32, i32) {
    %c0_i32 = arith.constant 0 : i32
    %c0_i32_0 = arith.constant 0 : i32
    return %arg0, %c0_i32 : i32, i32
  }
  func.func @transform_1(%arg0: i32) -> (i32, i32) {
    %c0_i32 = arith.constant 0 : i32
    %0 = arith.subi %c0_i32, %arg0 : i32
    %c0_i32_0 = arith.constant 0 : i32
    %c0_i32_1 = arith.constant 0 : i32
    return %0, %c0_i32_0 : i32, i32
  }
  func.func @transform_2(%arg0: i32) -> (i32, i32) {
    %c0_i32 = arith.constant 0 : i32
    %c0_i32_0 = arith.constant 0 : i32
    %c0_i32_1 = arith.constant 0 : i32
    return %c0_i32, %c0_i32_0 : i32, i32
  }
  func.func @transform_3(%arg0: i32) -> (i32, i32) {
    %c0_i32 = arith.constant 0 : i32
    %c0_i32_0 = arith.constant 0 : i32
    %c0_i32_1 = arith.constant 0 : i32
    return %c0_i32, %c0_i32_0 : i32, i32
  }
  func.func @transform_4(%arg0: i32) -> (i32, i32) {
    %c0_i32 = arith.constant 0 : i32
    %c0_i32_0 = arith.constant 0 : i32
    %c0_i32_1 = arith.constant 0 : i32
    return %c0_i32, %c0_i32_0 : i32, i32
  }
  func.func @transform_5(%arg0: i32) -> (i32, i32) {
    %c0_i32 = arith.constant 0 : i32
    %c0_i32_0 = arith.constant 0 : i32
    %c0_i32_1 = arith.constant 0 : i32
    return %c0_i32, %c0_i32_0 : i32, i32
  }
  func.func @transform_6(%arg0: i32) -> (i32, i32) {
    %c0_i32 = arith.constant 0 : i32
    %c0_i32_0 = arith.constant 0 : i32
    %c0_i32_1 = arith.constant 0 : i32
    return %c0_i32, %c0_i32_0 : i32, i32
  }
  func.func @transform_7(%arg0: i32) -> (i32, i32) {
    %c0_i32 = arith.constant 0 : i32
    %c0_i32_0 = arith.constant 0 : i32
    return %arg0, %c0_i32 : i32, i32
  }
  func.func @transform_8(%arg0: i32) -> (i32, i32) {
    %c0_i32 = arith.constant 0 : i32
    %0 = arith.subi %c0_i32, %arg0 : i32
    %c0_i32_0 = arith.constant 0 : i32
    %c0_i32_1 = arith.constant 0 : i32
    return %0, %c0_i32_0 : i32, i32
  }
}

module attributes {stable_mosaic.version = 11 : i64} {
  func.func @final_layer_kernel(%arg0: i32, %arg1: memref<128x64xbf16, #tpu.memory_space<vmem>>, %arg2: memref<64x32xbf16, #tpu.memory_space<vmem>>, %arg3: memref<64x32xbf16, #tpu.memory_space<vmem>>, %arg4: memref<32x32xbf16, #tpu.memory_space<vmem>>, %arg5: memref<32x32xbf16, #tpu.memory_space<vmem>>, %arg6: memref<1x64xf32, #tpu.memory_space<vmem>>, %arg7: memref<16x64xbf16, #tpu.memory_space<vmem>>, %arg8: memref<64x128xbf16, #tpu.memory_space<vmem>>, %arg9: memref<1x128xf32, #tpu.memory_space<vmem>>, %arg10: memref<16x128xf32, #tpu.memory_space<vmem>>, %arg11: memref<128x32xf32, #tpu.memory_space<vmem>>, %arg12: memref<16x32xbf16, #tpu.memory_space<vmem>>) attributes {dimension_semantics = [#tpu.dimension_semantics<arbitrary>], iteration_bounds = array<i64: 1>, scalar_prefetch = 0 : i64, scratch_operands = 2 : i64, tpu.core_type = #tpu.core_type<tc>, window_params = [{transform_indices = @transform_0, window_bounds = array<i64: 128, 64>}, {pipeline_mode = #tpu.pipeline_mode<synchronous>, transform_indices = @transform_1, window_bounds = array<i64: 64, 32>}, {pipeline_mode = #tpu.pipeline_mode<synchronous>, transform_indices = @transform_2, window_bounds = array<i64: 64, 32>}, {pipeline_mode = #tpu.pipeline_mode<synchronous>, transform_indices = @transform_3, window_bounds = array<i64: 32, 32>}, {pipeline_mode = #tpu.pipeline_mode<synchronous>, transform_indices = @transform_4, window_bounds = array<i64: 32, 32>}, {pipeline_mode = #tpu.pipeline_mode<synchronous>, transform_indices = @transform_5, window_bounds = array<i64: 1, 64>}, {pipeline_mode = #tpu.pipeline_mode<synchronous>, transform_indices = @transform_6, window_bounds = array<i64: 16, 64>}, {pipeline_mode = #tpu.pipeline_mode<synchronous>, transform_indices = @transform_7, window_bounds = array<i64: 64, 128>}, {pipeline_mode = #tpu.pipeline_mode<synchronous>, transform_indices = @transform_8, window_bounds = array<i64: 1, 128>}, {pipeline_mode = #tpu.pipeline_mode<synchronous>, transform_indices = @transform_9, window_bounds = array<i64: 16, 128>}]} {
    %c0_i32 = arith.constant 0 : i32
    %0 = arith.cmpi eq, %arg0, %c0_i32 : i32
    %1 = arith.extui %0 : i1 to i32
    %c0_i32_0 = arith.constant 0 : i32
    %2 = arith.cmpi ne, %1, %c0_i32_0 : i32
    scf.if %2 {
      %c0_54 = arith.constant 0 : index
      %c0_55 = arith.constant 0 : index
      %87 = vector.load %arg7[%c0_54, %c0_55] : memref<16x64xbf16, #tpu.memory_space<vmem>>, vector<16x32xbf16>
      %c0_56 = arith.constant 0 : index
      %c0_57 = arith.constant 0 : index
      %88 = vector.load %arg12[%c0_56, %c0_57] : memref<16x32xbf16, #tpu.memory_space<vmem>>, vector<16x32xbf16>
      tpu.vector_store %arg12[%c0_56, %c0_57], %87 {strides = array<i32>} : memref<16x32xbf16, #tpu.memory_space<vmem>>, vector<16x32xbf16>,
    } else {
    }
    %c0 = arith.constant 0 : index
    %c0_1 = arith.constant 0 : index
    %3 = vector.load %arg1[%c0, %c0_1] : memref<128x64xbf16, #tpu.memory_space<vmem>>, vector<128x64xbf16>
    %c0_2 = arith.constant 0 : index
    %c0_3 = arith.constant 0 : index
    %4 = vector.load %arg2[%c0_2, %c0_3] : memref<64x32xbf16, #tpu.memory_space<vmem>>, vector<64x32xbf16>
    %cst = arith.constant dense<0.000000e+00> : vector<128x32xf32>
    %5 = tpu.matmul %3, %4, %cst {dimension_numbers = #tpu.dot_dimension_numbers<[1], [0], [0], [1], [0, 0, 1, 1], [], []>} : vector<128x64xbf16>, vector<64x32xbf16>, vector<128x32xf32> -> vector<128x32xf32>
    %c0_4 = arith.constant 0 : index
    %c0_5 = arith.constant 0 : index
    %6 = vector.load %arg6[%c0_4, %c0_5] : memref<1x64xf32, #tpu.memory_space<vmem>>, vector<1x32xf32>
    %7 = vector.broadcast %6 : vector<1x32xf32> to vector<128x32xf32>
    %8 = arith.addf %5, %7 : vector<128x32xf32>
    %c0_6 = arith.constant 0 : index
    %c0_7 = arith.constant 0 : index
    %9 = vector.load %arg11[%c0_6, %c0_7] : memref<128x32xf32, #tpu.memory_space<vmem>>, vector<128x32xf32>
    tpu.vector_store %arg11[%c0_6, %c0_7], %8 {strides = array<i32>} : memref<128x32xf32, #tpu.memory_space<vmem>>, vector<128x32xf32>,
    %c0_8 = arith.constant 0 : index
    %c0_9 = arith.constant 0 : index
    %10 = vector.load %arg12[%c0_8, %c0_9] : memref<16x32xbf16, #tpu.memory_space<vmem>>, vector<16x32xbf16>
    %c0_i32_10 = arith.constant 0 : i32
    %c0_11 = arith.constant 0 : index
    %c0_12 = arith.constant 0 : index
    %11 = vector.load %arg4[%c0_11, %c0_12] : memref<32x32xbf16, #tpu.memory_space<vmem>>, vector<32x32xbf16>
    %cst_13 = arith.constant dense<0.000000e+00> : vector<16x32xf32>
    %12 = tpu.matmul %10, %11, %cst_13 {dimension_numbers = #tpu.dot_dimension_numbers<[1], [0], [0], [1], [0, 0, 1, 1], [], []>} : vector<16x32xbf16>, vector<32x32xbf16>, vector<16x32xf32> -> vector<16x32xf32>
    %c16_i32 = arith.constant 16 : i32
    %13 = arith.muli %c0_i32_10, %c16_i32 : i32
    %14 = tpu.assume_multiple %13, 16 : i32
    %15 = arith.index_cast %14 : i32 to index
    %c0_14 = arith.constant 0 : index
    %16 = vector.load %arg11[%15, %c0_14] : memref<128x32xf32, #tpu.memory_space<vmem>>, vector<16x32xf32>
    %17 = arith.addf %16, %12 : vector<16x32xf32>
    %18 = math.tanh %17 : vector<16x32xf32>
    %19 = arith.truncf %18 : vector<16x32xf32> to vector<16x32xbf16>
    %c1_i32 = arith.constant 1 : i32
    %c0_15 = arith.constant 0 : index
    %c0_16 = arith.constant 0 : index
    %20 = vector.load %arg4[%c0_15, %c0_16] : memref<32x32xbf16, #tpu.memory_space<vmem>>, vector<32x32xbf16>
    %cst_17 = arith.constant dense<0.000000e+00> : vector<16x32xf32>
    %21 = tpu.matmul %19, %20, %cst_17 {dimension_numbers = #tpu.dot_dimension_numbers<[1], [0], [0], [1], [0, 0, 1, 1], [], []>} : vector<16x32xbf16>, vector<32x32xbf16>, vector<16x32xf32> -> vector<16x32xf32>
    %c16_i32_18 = arith.constant 16 : i32
    %22 = arith.muli %c1_i32, %c16_i32_18 : i32
    %23 = tpu.assume_multiple %22, 16 : i32
    %24 = arith.index_cast %23 : i32 to index
    %c0_19 = arith.constant 0 : index
    %25 = vector.load %arg11[%24, %c0_19] : memref<128x32xf32, #tpu.memory_space<vmem>>, vector<16x32xf32>
    %26 = arith.addf %25, %21 : vector<16x32xf32>
    %27 = math.tanh %26 : vector<16x32xf32>
    %28 = arith.truncf %27 : vector<16x32xf32> to vector<16x32xbf16>
    %c2_i32 = arith.constant 2 : i32
    %c0_20 = arith.constant 0 : index
    %c0_21 = arith.constant 0 : index
    %29 = vector.load %arg4[%c0_20, %c0_21] : memref<32x32xbf16, #tpu.memory_space<vmem>>, vector<32x32xbf16>
    %cst_22 = arith.constant dense<0.000000e+00> : vector<16x32xf32>
    %30 = tpu.matmul %28, %29, %cst_22 {dimension_numbers = #tpu.dot_dimension_numbers<[1], [0], [0], [1], [0, 0, 1, 1], [], []>} : vector<16x32xbf16>, vector<32x32xbf16>, vector<16x32xf32> -> vector<16x32xf32>
    %c16_i32_23 = arith.constant 16 : i32
    %31 = arith.muli %c2_i32, %c16_i32_23 : i32
    %32 = tpu.assume_multiple %31, 16 : i32
    %33 = arith.index_cast %32 : i32 to index
    %c0_24 = arith.constant 0 : index
    %34 = vector.load %arg11[%33, %c0_24] : memref<128x32xf32, #tpu.memory_space<vmem>>, vector<16x32xf32>
    %35 = arith.addf %34, %30 : vector<16x32xf32>
    %36 = math.tanh %35 : vector<16x32xf32>
    %37 = arith.truncf %36 : vector<16x32xf32> to vector<16x32xbf16>
    %c3_i32 = arith.constant 3 : i32
    %c0_25 = arith.constant 0 : index
    %c0_26 = arith.constant 0 : index
    %38 = vector.load %arg4[%c0_25, %c0_26] : memref<32x32xbf16, #tpu.memory_space<vmem>>, vector<32x32xbf16>
    %cst_27 = arith.constant dense<0.000000e+00> : vector<16x32xf32>
    %39 = tpu.matmul %37, %38, %cst_27 {dimension_numbers = #tpu.dot_dimension_numbers<[1], [0], [0], [1], [0, 0, 1, 1], [], []>} : vector<16x32xbf16>, vector<32x32xbf16>, vector<16x32xf32> -> vector<16x32xf32>
    %c16_i32_28 = arith.constant 16 : i32
    %40 = arith.muli %c3_i32, %c16_i32_28 : i32
    %41 = tpu.assume_multiple %40, 16 : i32
    %42 = arith.index_cast %41 : i32 to index
    %c0_29 = arith.constant 0 : index
    %43 = vector.load %arg11[%42, %c0_29] : memref<128x32xf32, #tpu.memory_space<vmem>>, vector<16x32xf32>
    %44 = arith.addf %43, %39 : vector<16x32xf32>
    %45 = math.tanh %44 : vector<16x32xf32>
    %46 = arith.truncf %45 : vector<16x32xf32> to vector<16x32xbf16>
    %c4_i32 = arith.constant 4 : i32
    %c0_30 = arith.constant 0 : index
    %c0_31 = arith.constant 0 : index
    %47 = vector.load %arg4[%c0_30, %c0_31] : memref<32x32xbf16, #tpu.memory_space<vmem>>, vector<32x32xbf16>
    %cst_32 = arith.constant dense<0.000000e+00> : vector<16x32xf32>
    %48 = tpu.matmul %46, %47, %cst_32 {dimension_numbers = #tpu.dot_dimension_numbers<[1], [0], [0], [1], [0, 0, 1, 1], [], []>} : vector<16x32xbf16>, vector<32x32xbf16>, vector<16x32xf32> -> vector<16x32xf32>
    %c16_i32_33 = arith.constant 16 : i32
    %49 = arith.muli %c4_i32, %c16_i32_33 : i32
    %50 = tpu.assume_multiple %49, 16 : i32
    %51 = arith.index_cast %50 : i32 to index
    %c0_34 = arith.constant 0 : index
    %52 = vector.load %arg11[%51, %c0_34] : memref<128x32xf32, #tpu.memory_space<vmem>>, vector<16x32xf32>
    %53 = arith.addf %52, %48 : vector<16x32xf32>
    %54 = math.tanh %53 : vector<16x32xf32>
    %55 = arith.truncf %54 : vector<16x32xf32> to vector<16x32xbf16>
    %c5_i32 = arith.constant 5 : i32
    %c0_35 = arith.constant 0 : index
    %c0_36 = arith.constant 0 : index
    %56 = vector.load %arg4[%c0_35, %c0_36] : memref<32x32xbf16, #tpu.memory_space<vmem>>, vector<32x32xbf16>
    %cst_37 = arith.constant dense<0.000000e+00> : vector<16x32xf32>
    %57 = tpu.matmul %55, %56, %cst_37 {dimension_numbers = #tpu.dot_dimension_numbers<[1], [0], [0], [1], [0, 0, 1, 1], [], []>} : vector<16x32xbf16>, vector<32x32xbf16>, vector<16x32xf32> -> vector<16x32xf32>
    %c16_i32_38 = arith.constant 16 : i32
    %58 = arith.muli %c5_i32, %c16_i32_38 : i32
    %59 = tpu.assume_multiple %58, 16 : i32
    %60 = arith.index_cast %59 : i32 to index
    %c0_39 = arith.constant 0 : index
    %61 = vector.load %arg11[%60, %c0_39] : memref<128x32xf32, #tpu.memory_space<vmem>>, vector<16x32xf32>
    %62 = arith.addf %61, %57 : vector<16x32xf32>
    %63 = math.tanh %62 : vector<16x32xf32>
    %64 = arith.truncf %63 : vector<16x32xf32> to vector<16x32xbf16>
    %c6_i32 = arith.constant 6 : i32
    %c0_40 = arith.constant 0 : index
    %c0_41 = arith.constant 0 : index
    %65 = vector.load %arg4[%c0_40, %c0_41] : memref<32x32xbf16, #tpu.memory_space<vmem>>, vector<32x32xbf16>
    %cst_42 = arith.constant dense<0.000000e+00> : vector<16x32xf32>
    %66 = tpu.matmul %64, %65, %cst_42 {dimension_numbers = #tpu.dot_dimension_numbers<[1], [0], [0], [1], [0, 0, 1, 1], [], []>} : vector<16x32xbf16>, vector<32x32xbf16>, vector<16x32xf32> -> vector<16x32xf32>
    %c16_i32_43 = arith.constant 16 : i32
    %67 = arith.muli %c6_i32, %c16_i32_43 : i32
    %68 = tpu.assume_multiple %67, 16 : i32
    %69 = arith.index_cast %68 : i32 to index
    %c0_44 = arith.constant 0 : index
    %70 = vector.load %arg11[%69, %c0_44] : memref<128x32xf32, #tpu.memory_space<vmem>>, vector<16x32xf32>
    %71 = arith.addf %70, %66 : vector<16x32xf32>
    %72 = math.tanh %71 : vector<16x32xf32>
    %73 = arith.truncf %72 : vector<16x32xf32> to vector<16x32xbf16>
    %c7_i32 = arith.constant 7 : i32
    %c0_45 = arith.constant 0 : index
    %c0_46 = arith.constant 0 : index
    %74 = vector.load %arg4[%c0_45, %c0_46] : memref<32x32xbf16, #tpu.memory_space<vmem>>, vector<32x32xbf16>
    %cst_47 = arith.constant dense<0.000000e+00> : vector<16x32xf32>
    %75 = tpu.matmul %73, %74, %cst_47 {dimension_numbers = #tpu.dot_dimension_numbers<[1], [0], [0], [1], [0, 0, 1, 1], [], []>} : vector<16x32xbf16>, vector<32x32xbf16>, vector<16x32xf32> -> vector<16x32xf32>
    %c16_i32_48 = arith.constant 16 : i32
    %76 = arith.muli %c7_i32, %c16_i32_48 : i32
    %77 = tpu.assume_multiple %76, 16 : i32
    %78 = arith.index_cast %77 : i32 to index
    %c0_49 = arith.constant 0 : index
    %79 = vector.load %arg11[%78, %c0_49] : memref<128x32xf32, #tpu.memory_space<vmem>>, vector<16x32xf32>
    %80 = arith.addf %79, %75 : vector<16x32xf32>
    %81 = math.tanh %80 : vector<16x32xf32>
    %82 = arith.truncf %81 : vector<16x32xf32> to vector<16x32xbf16>
    %c8_i32 = arith.constant 8 : i32
    %c0_50 = arith.constant 0 : index
    %c0_51 = arith.constant 0 : index
    %83 = vector.load %arg12[%c0_50, %c0_51] : memref<16x32xbf16, #tpu.memory_space<vmem>>, vector<16x32xbf16>
    tpu.vector_store %arg12[%c0_50, %c0_51], %82 {strides = array<i32>} : memref<16x32xbf16, #tpu.memory_space<vmem>>, vector<16x32xbf16>,
    %c0_i32_52 = arith.constant 0 : i32
    %84 = arith.cmpi eq, %arg0, %c0_i32_52 : i32
    %85 = arith.extui %84 : i1 to i32
    %c0_i32_53 = arith.constant 0 : i32
    %86 = arith.cmpi ne, %85, %c0_i32_53 : i32
    scf.if %86 {
      %c112 = arith.constant 112 : index
      %c0_54 = arith.constant 0 : index
      %87 = vector.load %arg1[%c112, %c0_54] : memref<128x64xbf16, #tpu.memory_space<vmem>>, vector<16x64xbf16>
      %c0_55 = arith.constant 0 : index
      %c0_56 = arith.constant 0 : index
      %88 = vector.load %arg3[%c0_55, %c0_56] : memref<64x32xbf16, #tpu.memory_space<vmem>>, vector<64x32xbf16>
      %cst_57 = arith.constant dense<0.000000e+00> : vector<16x32xf32>
      %89 = tpu.matmul %87, %88, %cst_57 {dimension_numbers = #tpu.dot_dimension_numbers<[1], [0], [0], [1], [0, 0, 1, 1], [], []>} : vector<16x64xbf16>, vector<64x32xbf16>, vector<16x32xf32> -> vector<16x32xf32>
      %c0_58 = arith.constant 0 : index
      %c32 = arith.constant 32 : index
      %90 = vector.load %arg7[%c0_58, %c32] : memref<16x64xbf16, #tpu.memory_space<vmem>>, vector<16x32xbf16>
      %c0_59 = arith.constant 0 : index
      %c0_60 = arith.constant 0 : index
      %91 = vector.load %arg5[%c0_59, %c0_60] : memref<32x32xbf16, #tpu.memory_space<vmem>>, vector<32x32xbf16>
      %cst_61 = arith.constant dense<0.000000e+00> : vector<16x32xf32>
      %92 = tpu.matmul %90, %91, %cst_61 {dimension_numbers = #tpu.dot_dimension_numbers<[1], [0], [0], [1], [0, 0, 1, 1], [], []>} : vector<16x32xbf16>, vector<32x32xbf16>, vector<16x32xf32> -> vector<16x32xf32>
      %93 = arith.addf %89, %92 : vector<16x32xf32>
      %c0_62 = arith.constant 0 : index
      %c32_63 = arith.constant 32 : index
      %94 = vector.load %arg6[%c0_62, %c32_63] : memref<1x64xf32, #tpu.memory_space<vmem>>, vector<1x32xf32>
      %95 = vector.broadcast %94 : vector<1x32xf32> to vector<16x32xf32>
      %96 = arith.addf %93, %95 : vector<16x32xf32>
      %97 = math.tanh %96 : vector<16x32xf32>
      %98 = arith.truncf %97 : vector<16x32xf32> to vector<16x32xbf16>
      %c0_64 = arith.constant 0 : index
      %c0_65 = arith.constant 0 : index
      %99 = vector.load %arg8[%c0_64, %c0_65] : memref<64x128xbf16, #tpu.memory_space<vmem>>, vector<32x128xbf16>
      %cst_66 = arith.constant dense<0.000000e+00> : vector<16x128xf32>
      %100 = tpu.matmul %82, %99, %cst_66 {dimension_numbers = #tpu.dot_dimension_numbers<[1], [0], [0], [1], [0, 0, 1, 1], [], []>} : vector<16x32xbf16>, vector<32x128xbf16>, vector<16x128xf32> -> vector<16x128xf32>
      %c32_67 = arith.constant 32 : index
      %c0_68 = arith.constant 0 : index
      %101 = vector.load %arg8[%c32_67, %c0_68] : memref<64x128xbf16, #tpu.memory_space<vmem>>, vector<32x128xbf16>
      %cst_69 = arith.constant dense<0.000000e+00> : vector<16x128xf32>
      %102 = tpu.matmul %98, %101, %cst_69 {dimension_numbers = #tpu.dot_dimension_numbers<[1], [0], [0], [1], [0, 0, 1, 1], [], []>} : vector<16x32xbf16>, vector<32x128xbf16>, vector<16x128xf32> -> vector<16x128xf32>
      %103 = arith.addf %100, %102 : vector<16x128xf32>
      %c0_70 = arith.constant 0 : index
      %c0_71 = arith.constant 0 : index
      %104 = vector.load %arg9[%c0_70, %c0_71] : memref<1x128xf32, #tpu.memory_space<vmem>>, vector<1x128xf32>
      %105 = vector.broadcast %104 : vector<1x128xf32> to vector<16x128xf32>
      %106 = arith.addf %103, %105 : vector<16x128xf32>
      %c0_72 = arith.constant 0 : index
      %c0_73 = arith.constant 0 : index
      %107 = vector.load %arg10[%c0_72, %c0_73] : memref<16x128xf32, #tpu.memory_space<vmem>>, vector<16x128xf32>
      tpu.vector_store %arg10[%c0_72, %c0_73], %106 {strides = array<i32>} : memref<16x128xf32, #tpu.memory_space<vmem>>, vector<16x128xf32>,
    } else {
    }
    return
  }
  func.func @transform_0(%arg0: i32) -> (i32, i32) {
    %c0_i32 = arith.constant 0 : i32
    %c0_i32_0 = arith.constant 0 : i32
    return %arg0, %c0_i32 : i32, i32
  }
  func.func @transform_1(%arg0: i32) -> (i32, i32) {
    %c0_i32 = arith.constant 0 : i32
    %c0_i32_0 = arith.constant 0 : i32
    %c0_i32_1 = arith.constant 0 : i32
    return %c0_i32, %c0_i32_0 : i32, i32
  }
  func.func @transform_2(%arg0: i32) -> (i32, i32) {
    %c0_i32 = arith.constant 0 : i32
    %c0_i32_0 = arith.constant 0 : i32
    %c0_i32_1 = arith.constant 0 : i32
    return %c0_i32, %c0_i32_0 : i32, i32
  }
  func.func @transform_3(%arg0: i32) -> (i32, i32) {
    %c0_i32 = arith.constant 0 : i32
    %c0_i32_0 = arith.constant 0 : i32
    %c0_i32_1 = arith.constant 0 : i32
    return %c0_i32, %c0_i32_0 : i32, i32
  }
  func.func @transform_4(%arg0: i32) -> (i32, i32) {
    %c0_i32 = arith.constant 0 : i32
    %c0_i32_0 = arith.constant 0 : i32
    %c0_i32_1 = arith.constant 0 : i32
    return %c0_i32, %c0_i32_0 : i32, i32
  }
  func.func @transform_5(%arg0: i32) -> (i32, i32) {
    %c0_i32 = arith.constant 0 : i32
    %c0_i32_0 = arith.constant 0 : i32
    %c0_i32_1 = arith.constant 0 : i32
    return %c0_i32, %c0_i32_0 : i32, i32
  }
  func.func @transform_6(%arg0: i32) -> (i32, i32) {
    %c0_i32 = arith.constant 0 : i32
    %c0_i32_0 = arith.constant 0 : i32
    %c0_i32_1 = arith.constant 0 : i32
    return %c0_i32, %c0_i32_0 : i32, i32
  }
  func.func @transform_7(%arg0: i32) -> (i32, i32) {
    %c0_i32 = arith.constant 0 : i32
    %c0_i32_0 = arith.constant 0 : i32
    %c0_i32_1 = arith.constant 0 : i32
    return %c0_i32, %c0_i32_0 : i32, i32
  }
  func.func @transform_8(%arg0: i32) -> (i32, i32) {
    %c0_i32 = arith.constant 0 : i32
    %c0_i32_0 = arith.constant 0 : i32
    %c0_i32_1 = arith.constant 0 : i32
    return %c0_i32, %c0_i32_0 : i32, i32
  }
  func.func @transform_9(%arg0: i32) -> (i32, i32) {
    %c0_i32 = arith.constant 0 : i32
    %c0_i32_0 = arith.constant 0 : i32
    %c0_i32_1 = arith.constant 0 : i32
    return %c0_i32, %c0_i32_0 : i32, i32
  }
}

</mosaic_0001>

<bundles_post_ra>
// kernel: forward.3
= control target key start
LH: loop header
LB: loop body
LE: loop exit
PB: predicated region body
PF: predicated region fallthrough
CT: control target
= control target key end

     0   :  { %v1308_v1 = vmov 0.0   ;;  %vm1309_vm0 = vmmov 0   ;;  %vm142_vm1 = vcmask 523264   ;;  %vm45_vm2 = vcmask 261120   ;;  %s1310_s19 = smov 96   ;;  %s1581_s1 = inlined_call_operand.vmem [shape: bf16[64,32], index: 1, kind: input, shape index: {}]   ;;  %s1582_s0 = inlined_call_operand.vmem [shape: bf16[128,64], index: 0, kind: input, shape index: {}]   ;;  %s1583_s3 = inlined_call_operand.vmem [shape: bf16[32,32], index: 3, kind: input, shape index: {}]   ;;  %s1584_s6 = inlined_call_operand.vmem [shape: bf16[16,64], index: 6, kind: input, shape index: {}]   ;;  %s1585_s5 = inlined_call_operand.vmem [shape: f32[1,64], index: 5, kind: input, shape index: {}]   ;;  %s1586_s2 = inlined_call_operand.vmem [shape: bf16[64,32], index: 2, kind: input, shape index: {}]   ;;  %s1587_s4 = inlined_call_operand.vmem [shape: bf16[32,32], index: 4, kind: input, shape index: {}]   ;;  %s1588_s7 = inlined_call_operand.vmem [shape: bf16[64,128], index: 7, kind: input, shape index: {}]   ;;  %s1589_s8 = inlined_call_operand.vmem [shape: f32[1,128], index: 8, kind: input, shape index: {}]   ;;  %s1590_s9 = inlined_call_operand.vmem [shape: f32[16,128], index: 9, kind: output, shape index: {}]  }
   0x1   :  { %v1245_v0 = vld [vmem:[%s1581_s1] sm:$0xff]   ;;  %1142 = vmatprep.subr.bf16.mxu1 %v1308_v1  ;;  %1146 = vmatprep.mubr.msk.bf16.mxu1 %vm1309_vm0, %v1308_v1  ;;  %v1246_v2 = vld [vmem:[%s1581_s1 + $0x8] sm:$0xff]   ;;  %v1247_v3 = vld [vmem:[%s1581_s1 + $0x10] sm:$0xff]  }
   0x2   :  { %1118 = vmatprep.subr.bf16.mxu0 %v1245_v0  ;;  %v1249_v4 = vld [vmem:[%s1582_s0] sm:$0xff]   ;;  %v1248_v5 = vld [vmem:[%s1581_s1 + $0x18] sm:$0xff]   ;;  %v1388_v7 = vld [vmem:[%s1583_s3 + $0x8] sm:$0xff]  }
   0x3   :  { %1119 = vmatpush3.bf16.msra.mxu0 %v1245_v0  ;;  %1126 = vmatprep.mubr.msk.bf16.mxu0 %vm142_vm1, %v1249_v4  ;;  %v1383_v6 = vld [vmem:[%s1583_s3] sm:$0xff]   ;;  %v1250_v9 = vld [vmem:[%s1582_s0 + $0x8] sm:$0xff]   ;;  %v1254_v31 = vld [vmem:[%s1582_s0 + $0x10] sm:$0xff]  }
   0x4   :  { %1120 = vmatprep.subr.bf16.mxu0 %v1246_v2  ;;  %1143 = vmatpush3.bf16.msra.mxu1 %v1383_v6  ;;  %v1253_v8 = vld [vmem:[%s1584_s6] sm:$0xff]   ;;  %v1255_v32 = vld [vmem:[%s1582_s0 + $0x18] sm:$0xff]   ;;  %v1257_v0 = vld [vmem:[%s1582_s0 + $0x28] sm:$0xff]  }
   0x5   :  { %1144 = vmatprep.subr.bf16.mxu1 %v1308_v1  ;;  %46 = vst.msk [vmem:[#allocation3] sm:$0xff] %vm45_vm2, %v1253_v8  ;;  %v1417_v11 = vld [vmem:[%s1585_s5] ss:$0 sm:$0xff] }
   0x6   :  { %v1256_v63 = vld [vmem:[%s1582_s0 + $0x20] sm:$0xff]  }
   0x7   :  { %1121 = vmatpush3.bf16.msra.mxu0 %v1246_v2 }
   0x8   :  { %1122 = vmatprep.subr.bf16.mxu0 %v1247_v3  ;;  %1145 = vmatpush3.bf16.msra.mxu1 %v1388_v7 }
   0x9   :  { %1150 = vmatprep.subr.bf16.mxu1 %v1308_v1 }
   0xb   :  { %1123 = vmatpush3.bf16.msra.mxu0 %v1247_v3 }
   0xc   :  { %1124 = vmatprep.subr.bf16.mxu0 %v1248_v5  ;;  %v281_v10 = vld [vmem:[#allocation3] sm:$0xff] }
   0xd   :  { %1147 = vmatmul.mubr.msk.bf16.vlgmr.msra.gmra.mrb[0].mxu1 %vm45_vm2, %v281_v10 }
   0xe   :  { %1151 = vmatpush3.bf16.msra.mxu1 %v1383_v6  ;;  %1154 = vmatprep.mubr.msk.bf16.mxu1 %vm1309_vm0, %v1308_v1 }
   0xf   :  { %1125 = vmatpush3.bf16.msra.mxu0 %v1248_v5  ;;  %1152 = vmatprep.subr.bf16.mxu1 %v1308_v1 }
  0x10   :  { %1182 = vmatprep.subr.bf16.mxu0 %v1308_v1 }
  0x12   :  { %1127 = vmatmul.mubr.msk.bf16.vlgmr.msra.gmra.mrb[0].mxu0 %vm142_vm1, %v1250_v9  ;;  %1153 = vmatpush3.bf16.msra.mxu1 %v1388_v7 }
  0x13   :  { %1183 = vmatpush3.bf16.msra.mxu0 %v1383_v6  ;;  %1158 = vmatprep.subr.bf16.mxu1 %v1308_v1 }
  0x14   :  { %1184 = vmatprep.subr.bf16.mxu0 %v1308_v1  ;;  %1130 = vmatprep.mubr.msk.bf16.mxu0 %vm142_vm1, %v1254_v31 }
  0x17   :  { %1185 = vmatpush3.bf16.msra.mxu0 %v1388_v7 }
  0x18   :  { %1198 = vmatprep.subr.bf16.mxu0 %v1308_v1 }
  0x1a   :  { %1131 = vmatmul.mubr.msk.bf16.gmra.mrb[4].mxu0 %vm142_vm1, %v1255_v32 }
  0x1b   :  { %1134 = vmatprep.mubr.msk.bf16.mxu0 %vm142_vm1, %v1256_v63 }
  0x22   :  { %1135 = vmatmul.mubr.msk.bf16.gmra.mrb[8].mxu0 %vm142_vm1, %v1257_v0 }
  0xe0   :  { %v335_v13 = vpop.f32.mrb[0].mxu1 }
  0xe1   :  { %v1148_v16 = vpop.f32.mrb[1].mxu1 }
  0xe2   :  { %v338_v19 = vpop.f32.mrb[2].mxu1 }
  0xe3   :  { %v1149_v22 = vpop.f32.mrb[3].mxu1 }
  0xe5   :  { %v1128_v12 = vpop.f32.mrb[0].mxu0 }
  0xe6   :  { %v210_v14 = vadd.f32 %v1128_v12, %v1417_v11  ;;  %v201_v15 = vpop.f32.mrb[1].mxu0 }
  0xe7   :  { %v202_v17 = vadd.f32 %v1417_v11, %v201_v15  ;;  %v1129_v18 = vpop.f32.mrb[2].mxu0 }
  0xe8   :  { %267 = vst.msk [vmem:[#allocation2 + $0x10] sm:$0xff] %vm45_vm2, %v210_v14  ;;  %v213_v20 = vadd.f32 %v1129_v18, %v1417_v11  ;;  %v204_v21 = vpop.f32.mrb[3].mxu0 }
  0xe9   :  { %265 = vst.msk [vmem:[#allocation2] sm:$0xff] %vm45_vm2, %v202_v17  ;;  %v205_v23 = vadd.f32 %v1417_v11, %v204_v21 }
  0xea   :  { %268 = vst.msk [vmem:[#allocation2 + $0x18] sm:$0xff] %vm45_vm2, %v213_v20 }
  0xeb   :  { %266 = vst.msk [vmem:[#allocation2 + $0x8] sm:$0xff] %vm45_vm2, %v205_v23 }
  0xed   :  { %v1132_v44 = vpop.f32.mrb[4].mxu0 }
  0xee   :  { %v226_v45 = vadd.f32 %v1132_v44, %v1417_v11  ;;  %v217_v46 = vpop.f32.mrb[5].mxu0 }
  0xef   :  { %v394_v34 = vld [vmem:[#allocation2 + $0x10] sm:$0xff]  ;;  %v218_v47 = vadd.f32 %v1417_v11, %v217_v46  ;;  %v1133_v48 = vpop.f32.mrb[6].mxu0 }
  0xf0   :  { %v342_v24 = vld [vmem:[#allocation2] sm:$0xff]  ;;  %271 = vst.msk [vmem:[#allocation2 + $0x30] sm:$0xff] %vm45_vm2, %v226_v45  ;;  %v229_v49 = vadd.f32 %v1133_v48, %v1417_v11  ;;  %v220_v50 = vpop.f32.mrb[7].mxu0 }
  0xf1   :  { %v344_v25 = vadd.f32 %v342_v24, %v335_v13  ;;  %v395_v38 = vld [vmem:[#allocation2 + $0x18] sm:$0xff]  ;;  %269 = vst.msk [vmem:[#allocation2 + $0x20] sm:$0xff] %vm45_vm2, %v218_v47  ;;  %v221_v51 = vadd.f32 %v1417_v11, %v220_v50  ;;  %v1258_v24 = vld [vmem:[%s1582_s0 + $0x30] sm:$0xff]  }
  0xf2   :  { %v343_v26 = vld [vmem:[#allocation2 + $0x8] sm:$0xff]  ;;  %272 = vst.msk [vmem:[#allocation2 + $0x38] sm:$0xff] %vm45_vm2, %v229_v49  ;;  %1138 = vmatprep.mubr.msk.bf16.mxu0 %vm142_vm1, %v1258_v24 }
  0xf3   :  { %v345_v27 = vadd.f32 %v343_v26, %v338_v19  ;;  %1272 = vtanh.f32 %v344_v25  ;;  %270 = vst.msk [vmem:[#allocation2 + $0x28] sm:$0xff] %vm45_vm2, %v221_v51  ;;  %v1259_v25 = vld [vmem:[%s1582_s0 + $0x38] sm:$0xff]  }
  0xf4   :  { %1139 = vmatmul.mubr.msk.bf16.gmra.mrb[12].mxu0 %vm142_vm1, %v1259_v25 }
  0xf5   :  { %1274 = vtanh.f32 %v345_v27  ;;  %v1136_v16 = vpop.f32.mrb[8].mxu0  ;;  %1186 = vmatprep.mubr.msk.bf16.mxu0 %vm1309_vm0, %v1308_v1 }
  0xf6   :  { %v242_v17 = vadd.f32 %v1136_v16, %v1417_v11  ;;  %v233_v18 = vpop.f32.mrb[9].mxu0 }
  0xf7   :  { %v498_v3 = vld [vmem:[#allocation2 + $0x30] sm:$0xff]  ;;  %v234_v19 = vadd.f32 %v1417_v11, %v233_v18  ;;  %v1137_v20 = vpop.f32.mrb[10].mxu0  ;;  %v1269_v18 = vld [vmem:[%s1588_s7 + $0x18] sm:$0xff]  }
  0xf8   :  { %v446_v52 = vld [vmem:[#allocation2 + $0x20] sm:$0xff]  ;;  %275 = vst.msk [vmem:[#allocation2 + $0x50] sm:$0xff] %vm45_vm2, %v242_v17  ;;  %v245_v21 = vadd.f32 %v1137_v20, %v1417_v11  ;;  %v236_v22 = vpop.f32.mrb[11].mxu0  ;;  %v1268_v17 = vld [vmem:[%s1588_s7 + $0x10] sm:$0xff]  }
  0xf9   :  { %v499_v9 = vld [vmem:[#allocation2 + $0x38] sm:$0xff]  ;;  %273 = vst.msk [vmem:[#allocation2 + $0x40] sm:$0xff] %vm45_vm2, %v234_v19  ;;  %v237_v23 = vadd.f32 %v1417_v11, %v236_v22 }
  0xfa   :  { %v447_v57 = vld [vmem:[#allocation2 + $0x28] sm:$0xff]  ;;  %276 = vst.msk [vmem:[#allocation2 + $0x58] sm:$0xff] %vm45_vm2, %v245_v21 }
  0xfb   :  { %274 = vst.msk [vmem:[#allocation2 + $0x48] sm:$0xff] %vm45_vm2, %v237_v23 }
  0xfd   :  { %v1273_v28 = vpop.eup %1272 }
  0xff   :  { %v1275_v29 = vpop.eup %1274  ;;  %v602_v45 = vld [vmem:[#allocation2 + $0x50] sm:$0xff] }
 0x100   :  { %v348_v30 = vpack.c.bf16 %v1275_v29, %v1273_v28  ;;  %v550_v26 = vld [vmem:[#allocation2 + $0x40] sm:$0xff] }
 0x101   :  { %v603_v49 = vld [vmem:[#allocation2 + $0x58] sm:$0xff] }
 0x102   :  { %1155 = vmatmul.mubr.msk.bf16.vlgmr.msra.gmra.mrb[4].mxu1 %vm45_vm2, %v348_v30  ;;  %v551_v31 = vld [vmem:[#allocation2 + $0x48] sm:$0xff] }
 0x103   :  { %1159 = vmatpush3.bf16.msra.mxu1 %v1383_v6  ;;  %1162 = vmatprep.mubr.msk.bf16.mxu1 %vm1309_vm0, %v1308_v1 }
 0x104   :  { %1160 = vmatprep.subr.bf16.mxu1 %v1308_v1 }
 0x107   :  { %1161 = vmatpush3.bf16.msra.mxu1 %v1388_v7 }
 0x108   :  { %1166 = vmatprep.subr.bf16.mxu1 %v1308_v1 }
 0x1d5   :  { %v386_v33 = vpop.f32.mrb[4].mxu1 }
 0x1d6   :  { %v396_v35 = vadd.f32 %v394_v34, %v386_v33  ;;  %v1156_v36 = vpop.f32.mrb[5].mxu1 }
 0x1d7   :  { %v389_v37 = vpop.f32.mrb[6].mxu1 }
 0x1d8   :  { %v397_v39 = vadd.f32 %v395_v38, %v389_v37  ;;  %v1157_v40 = vpop.f32.mrb[7].mxu1  ;;  %1276 = vtanh.f32 %v396_v35  ;;  %v1140_v37 = vpop.f32.mrb[12].mxu0 }
 0x1d9   :  { %v258_v38 = vadd.f32 %v1140_v37, %v1417_v11 }
 0x1da   :  { %1278 = vtanh.f32 %v397_v39  ;;  %v249_v39 = vpop.f32.mrb[13].mxu0 }
 0x1db   :  { %v250_v40 = vadd.f32 %v1417_v11, %v249_v39  ;;  %279 = vst.msk [vmem:[#allocation2 + $0x70] sm:$0xff] %vm45_vm2, %v258_v38 }
 0x1dd   :  { %277 = vst.msk [vmem:[#allocation2 + $0x60] sm:$0xff] %vm45_vm2, %v250_v40 }
 0x1e2   :  { %v1277_v41 = vpop.eup %1276  ;;  %v706_v20 = vld [vmem:[#allocation2 + $0x70] sm:$0xff] }
 0x1e4   :  { %v1279_v42 = vpop.eup %1278 }
 0x1e5   :  { %v400_v43 = vpack.c.bf16 %v1279_v42, %v1277_v41  ;;  %v1141_v41 = vpop.f32.mrb[14].mxu0 }
 0x1e6   :  { %v252_v42 = vpop.f32.mrb[15].mxu0 }
 0x1e7   :  { %1163 = vmatmul.mubr.msk.bf16.vlgmr.msra.gmra.mrb[8].mxu1 %vm45_vm2, %v400_v43  ;;  %v253_v43 = vadd.f32 %v1417_v11, %v252_v42  ;;  %v1271_v42 = vld [vmem:[%s1588_s7 + $0x8] sm:$0xff]  }
 0x1e8   :  { %1167 = vmatpush3.bf16.msra.mxu1 %v1383_v6  ;;  %1170 = vmatprep.mubr.msk.bf16.mxu1 %vm1309_vm0, %v1308_v1 }
 0x1e9   :  { %1168 = vmatprep.subr.bf16.mxu1 %v1308_v1  ;;  %278 = vst.msk [vmem:[#allocation2 + $0x68] sm:$0xff] %vm45_vm2, %v253_v43 }
 0x1ec   :  { %1169 = vmatpush3.bf16.msra.mxu1 %v1388_v7 }
 0x1ed   :  { %1174 = vmatprep.subr.bf16.mxu1 %v1308_v1 }
 0x2ba   :  { %v438_v53 = vpop.f32.mrb[8].mxu1 }
 0x2bb   :  { %v448_v54 = vadd.f32 %v446_v52, %v438_v53  ;;  %v1164_v55 = vpop.f32.mrb[9].mxu1 }
 0x2bc   :  { %v441_v56 = vpop.f32.mrb[10].mxu1  ;;  %v1265_v55 = vld [vmem:[%s1587_s4 + $0x8] sm:$0xff]  }
 0x2bd   :  { %v449_v58 = vadd.f32 %v447_v57, %v441_v56  ;;  %v1165_v59 = vpop.f32.mrb[11].mxu1  ;;  %1280 = vtanh.f32 %v448_v54 }
 0x2bf   :  { %1282 = vtanh.f32 %v449_v58  ;;  %v654_v58 = vld [vmem:[#allocation2 + $0x60] sm:$0xff] }
 0x2c7   :  { %v1281_v60 = vpop.eup %1280 }
 0x2c9   :  { %v1283_v61 = vpop.eup %1282 }
 0x2ca   :  { %v452_v62 = vpack.c.bf16 %v1283_v61, %v1281_v60 }
 0x2cc   :  { %1171 = vmatmul.mubr.msk.bf16.vlgmr.msra.gmra.mrb[12].mxu1 %vm45_vm2, %v452_v62  ;;  %v655_v62 = vld [vmem:[#allocation2 + $0x68] sm:$0xff] }
 0x2cd   :  { %1175 = vmatpush3.bf16.msra.mxu1 %v1383_v6  ;;  %1178 = vmatprep.mubr.msk.bf16.mxu1 %vm1309_vm0, %v1308_v1 }
 0x2ce   :  { %1176 = vmatprep.subr.bf16.mxu1 %v1308_v1 }
 0x2d1   :  { %1177 = vmatpush3.bf16.msra.mxu1 %v1388_v7 }
 0x2d2   :  { %1190 = vmatprep.subr.bf16.mxu1 %v1308_v1 }
 0x39f   :  { %v490_v2 = vpop.f32.mrb[12].mxu1 }
 0x3a0   :  { %v500_v4 = vadd.f32 %v498_v3, %v490_v2  ;;  %v1172_v5 = vpop.f32.mrb[13].mxu1 }
 0x3a1   :  { %v493_v8 = vpop.f32.mrb[14].mxu1 }
 0x3a2   :  { %v501_v10 = vadd.f32 %v499_v9, %v493_v8  ;;  %v1173_v12 = vpop.f32.mrb[15].mxu1  ;;  %1284 = vtanh.f32 %v500_v4  ;;  %v1261_v4 = vld [vmem:[%s1586_s2] sm:$0xff]   ;;  %v1262_v8 = vld [vmem:[%s1586_s2 + $0x8] sm:$0xff]   ;;  %v1264_v9 = vld [vmem:[%s1586_s2 + $0x10] sm:$0xff]  }
 0x3a3   :  { %v1267_v12 = vld [vmem:[%s1582_s0 + $0x38] sm:$0xff]  }
 0x3a4   :  { %1286 = vtanh.f32 %v501_v10  ;;  %v1266_v10 = vld [vmem:[%s1586_s2 + $0x18] sm:$0xff]  }
 0x3ac   :  { %v1285_v13 = vpop.eup %1284 }
 0x3ae   :  { %v1287_v14 = vpop.eup %1286 }
 0x3af   :  { %v504_v15 = vpack.c.bf16 %v1287_v14, %v1285_v13 }
 0x3b1   :  { %1179 = vmatmul.mubr.msk.bf16.vlgmr.msra.gmra.mrb[16].mxu1 %vm45_vm2, %v504_v15 }
 0x3b2   :  { %1191 = vmatpush3.bf16.msra.mxu1 %v1383_v6  ;;  %1194 = vmatprep.mubr.msk.bf16.mxu1 %vm1309_vm0, %v1308_v1 }
 0x3b3   :  { %1192 = vmatprep.subr.bf16.mxu1 %v1308_v1 }
 0x3b6   :  { %1193 = vmatpush3.bf16.msra.mxu1 %v1388_v7 }
 0x3b7   :  { %1206 = vmatprep.subr.bf16.mxu1 %v1308_v1 }
 0x484   :  { %v542_v27 = vpop.f32.mrb[16].mxu1 }
 0x485   :  { %v552_v28 = vadd.f32 %v550_v26, %v542_v27  ;;  %v1180_v29 = vpop.f32.mrb[17].mxu1 }
 0x486   :  { %v545_v30 = vpop.f32.mrb[18].mxu1 }
 0x487   :  { %v553_v32 = vadd.f32 %v551_v31, %v545_v30  ;;  %v1181_v33 = vpop.f32.mrb[19].mxu1  ;;  %1288 = vtanh.f32 %v552_v28 }
 0x489   :  { %1290 = vtanh.f32 %v553_v32 }
 0x491   :  { %v1289_v34 = vpop.eup %1288 }
 0x493   :  { %v1291_v35 = vpop.eup %1290 }
 0x494   :  { %v556_v36 = vpack.c.bf16 %v1291_v35, %v1289_v34 }
 0x496   :  { %1187 = vmatmul.mubr.msk.bf16.vlgmr.msra.gmra.mrb[16].mxu0 %vm45_vm2, %v556_v36 }
 0x497   :  { %1199 = vmatpush3.bf16.msra.mxu0 %v1383_v6  ;;  %1202 = vmatprep.mubr.msk.bf16.mxu0 %vm1309_vm0, %v1308_v1  ;;  %v261_v6 = vadd.f32 %v1141_v41, %v1417_v11  ;;  %v1270_v41 = vld [vmem:[%s1588_s7] sm:$0xff]  }
 0x498   :  { %1200 = vmatprep.subr.bf16.mxu0 %v1308_v1 }
 0x499   :  { %280 = vst.msk [vmem:[#allocation2 + $0x78] sm:$0xff] %vm45_vm2, %v261_v6 }
 0x49b   :  { %1201 = vmatpush3.bf16.msra.mxu0 %v1388_v7  ;;  %v1260_v7 = vld [vmem:[%s1584_s6] sm:$0xff]  }
 0x49c   :  { %1214 = vmatprep.subr.bf16.mxu0 %v1308_v1  ;;  %738 = vrot.lane.b32.xlu0 %v1260_v7, %s1310_s19 }
 0x4a0   :  { %875 = vrot.lane.b32.xlu0 %v1417_v11, %s1310_s19  ;;  %v1263_v11 = vld [vmem:[%s1587_s4] sm:$0xff]   ;;  %v707_v24 = vld [vmem:[#allocation2 + $0x78] sm:$0xff] }
 0x50e   :  { %v739_v56 = vpop.permute.xlu0 %738 }
 0x512   :  { %v876_v30 = vpop.permute.xlu0 %875 }
 0x569   :  { %v594_v44 = vpop.f32.mrb[16].mxu0 }
 0x56a   :  { %v604_v46 = vadd.f32 %v602_v45, %v594_v44  ;;  %v1188_v47 = vpop.f32.mrb[17].mxu0 }
 0x56b   :  { %v597_v48 = vpop.f32.mrb[18].mxu0  ;;  %v1067_v47 = vld [vmem:[%s1589_s8] ss:$0 sm:$0xff] }
 0x56c   :  { %v605_v50 = vadd.f32 %v603_v49, %v597_v48  ;;  %v1189_v51 = vpop.f32.mrb[19].mxu0  ;;  %1292 = vtanh.f32 %v604_v46 }
 0x56e   :  { %1294 = vtanh.f32 %v605_v50 }
 0x576   :  { %v1293_v52 = vpop.eup %1292 }
 0x578   :  { %v1295_v53 = vpop.eup %1294 }
 0x579   :  { %v608_v54 = vpack.c.bf16 %v1295_v53, %v1293_v52 }
 0x57b   :  { %1195 = vmatmul.mubr.msk.bf16.vlgmr.msra.gmra.mrb[20].mxu1 %vm45_vm2, %v608_v54 }
 0x57c   :  { %1210 = vmatprep.mubr.msk.bf16.mxu1 %vm1309_vm0, %v1308_v1  ;;  %1207 = vmatpush3.bf16.msra.mxu1 %v1263_v11 }
 0x57d   :  { %1208 = vmatprep.subr.bf16.mxu1 %v1308_v1 }
 0x580   :  { %1209 = vmatpush3.bf16.msra.mxu1 %v1265_v55 }
 0x581   :  { %1226 = vmatprep.subr.bf16.mxu1 %v1308_v1 }
 0x583   :  { %1211 = vmatmul.mubr.msk.bf16.vlgmr.msra.gmra.mrb[24].mxu1 %vm45_vm2, %v739_v56 }
 0x584   :  { %1230 = vmatprep.mubr.msk.bf16.mxu1 %vm1309_vm0, %v1308_v1  ;;  %1227 = vmatpush3.bf16.msra.mxu1 %v1268_v17 }
 0x585   :  { %1228 = vmatprep.subr.bf16.mxu1 %v1308_v1 }
 0x588   :  { %1229 = vmatpush3.bf16.msra.mxu1 %v1269_v18 }
 0x589   :  { %1234 = vmatprep.subr.bf16.mxu1 %v1308_v1 }
 0x64e   :  { %v646_v57 = vpop.f32.mrb[20].mxu1 }
 0x64f   :  { %v656_v59 = vadd.f32 %v654_v58, %v646_v57  ;;  %v1196_v60 = vpop.f32.mrb[21].mxu1 }
 0x650   :  { %v649_v61 = vpop.f32.mrb[22].mxu1 }
 0x651   :  { %v657_v63 = vadd.f32 %v655_v62, %v649_v61  ;;  %v1197_v0 = vpop.f32.mrb[23].mxu1  ;;  %1296 = vtanh.f32 %v656_v59 }
 0x653   :  { %1298 = vtanh.f32 %v657_v63 }
 0x656   :  { %v789_v13 = vpop.f32.mrb[24].mxu1 }
 0x657   :  { %v1212_v14 = vpop.f32.mrb[25].mxu1 }
 0x658   :  { %v792_v15 = vpop.f32.mrb[26].mxu1 }
 0x659   :  { %v1213_v16 = vpop.f32.mrb[27].mxu1 }
 0x65b   :  { %v1297_v2 = vpop.eup %1296 }
 0x65d   :  { %v1299_v3 = vpop.eup %1298 }
 0x65e   :  { %v660_v5 = vpack.c.bf16 %v1299_v3, %v1297_v2 }
 0x660   :  { %1203 = vmatmul.mubr.msk.bf16.vlgmr.msra.gmra.mrb[20].mxu0 %vm45_vm2, %v660_v5 }
 0x661   :  { %1215 = vmatpush3.bf16.msra.mxu0 %v1261_v4  ;;  %1222 = vmatprep.mubr.msk.bf16.mxu0 %vm1309_vm0, %v1308_v1 }
 0x662   :  { %1216 = vmatprep.subr.bf16.mxu0 %v1308_v1 }
 0x665   :  { %1217 = vmatpush3.bf16.msra.mxu0 %v1262_v8 }
 0x666   :  { %1218 = vmatprep.subr.bf16.mxu0 %v1308_v1 }
 0x669   :  { %1219 = vmatpush3.bf16.msra.mxu0 %v1264_v9 }
 0x66a   :  { %1220 = vmatprep.subr.bf16.mxu0 %v1308_v1 }
 0x66d   :  { %1221 = vmatpush3.bf16.msra.mxu0 %v1266_v10 }
 0x670   :  { %1223 = vmatmul.mubr.msk.bf16.vlgmr.msra.gmra.mrb[24].mxu0 %vm142_vm1, %v1267_v12 }
 0x733   :  { %v698_v19 = vpop.f32.mrb[20].mxu0 }
 0x734   :  { %v708_v21 = vadd.f32 %v706_v20, %v698_v19  ;;  %v1204_v22 = vpop.f32.mrb[21].mxu0 }
 0x735   :  { %v701_v23 = vpop.f32.mrb[22].mxu0 }
 0x736   :  { %v709_v25 = vadd.f32 %v707_v24, %v701_v23  ;;  %v1205_v26 = vpop.f32.mrb[23].mxu0  ;;  %1300 = vtanh.f32 %v708_v21 }
 0x738   :  { %1302 = vtanh.f32 %v709_v25 }
 0x740   :  { %v1301_v27 = vpop.eup %1300 }
 0x742   :  { %v1303_v28 = vpop.eup %1302 }
 0x743   :  { %v862_v29 = vpop.f32.mrb[24].mxu0  ;;  %v712_v31 = vpack.c.bf16 %v1303_v28, %v1301_v27 }
 0x744   :  { %v863_v32 = vadd.f32 %v862_v29, %v789_v13  ;;  %v1224_v33 = vpop.f32.mrb[25].mxu0 }
 0x745   :  { %v865_v34 = vpop.f32.mrb[26].mxu0  ;;  %713 = vst.msk [vmem:[#allocation3] sm:$0xff] %vm45_vm2, %v712_v31 }
 0x746   :  { %v878_v35 = vadd.f32 %v876_v30, %v863_v32  ;;  %v866_v36 = vadd.f32 %v865_v34, %v792_v15  ;;  %v1225_v37 = vpop.f32.mrb[27].mxu0 }
 0x748   :  { %v879_v38 = vadd.f32 %v876_v30, %v866_v36  ;;  %1304 = vtanh.f32 %v878_v35 }
 0x74a   :  { %1306 = vtanh.f32 %v879_v38 }
 0x752   :  { %v1305_v39 = vpop.eup %1304 }
 0x754   :  { %v1307_v40 = vpop.eup %1306 }
 0x755   :  { %v882_v6 = vpack.c.bf16 %v1307_v40, %v1305_v39 }
 0x757   :  { %1231 = vmatmul.mubr.msk.bf16.vlgmr.msra.gmra.mrb[28].mxu1 %vm45_vm2, %v882_v6 }
 0x758   :  { %1235 = vmatpush3.bf16.msra.mxu1 %v1270_v41  ;;  %1238 = vmatprep.mubr.msk.bf16.mxu1 %vm1309_vm0, %v1308_v1 }
 0x759   :  { %1236 = vmatprep.subr.bf16.mxu1 %v1308_v1 }
 0x75c   :  { %1237 = vmatpush3.bf16.msra.mxu1 %v1271_v42 }
 0x75f   :  { %1239 = vmatmul.mubr.msk.bf16.vlgmr.msra.gmra.mrb[32].mxu1 %vm45_vm2, %v712_v31 }
 0x82a   :  { %v940_v43 = vpop.f32.mrb[28].mxu1 }
 0x82b   :  { %v1232_v7 = vpop.f32.mrb[29].mxu1 }
 0x82c   :  { %v943_v44 = vpop.f32.mrb[30].mxu1 }
 0x82d   :  { %v1233_v45 = vpop.f32.mrb[31].mxu1 }
 0x832   :  { %v996_v46 = vpop.f32.mrb[32].mxu1 }
 0x833   :  { %v997_v48 = vadd.f32 %v996_v46, %v940_v43  ;;  %v1240_v49 = vpop.f32.mrb[33].mxu1 }
 0x834   :  { %v999_v50 = vpop.f32.mrb[34].mxu1 }
 0x835   :  { %v1010_v51 = vadd.f32 %v1067_v47, %v997_v48  ;;  %v1000_v52 = vadd.f32 %v999_v50, %v943_v44  ;;  %v1241_v53 = vpop.f32.mrb[35].mxu1 }
 0x837   :  { %1012 = vst [vmem:[%s1590_s9] sm:$0xff] %v1010_v51  ;;  %v1011_v1 = vadd.f32 %v1067_v47, %v1000_v52 }
 0x839   :  { %1013 = vst [vmem:[%s1590_s9 + $0x8] sm:$0xff] %v1011_v1 }

// kernel: forward.2
= control target key start
LH: loop header
LB: loop body
LE: loop exit
PB: predicated region body
PF: predicated region fallthrough
CT: control target
= control target key end

     0   :  { %vm150_vm0 = vcmask 130048   ;;  %v2020_v4 = vmov 0.0   ;;  %vm77_vm1 = vcmask 523264   ;;  %s2021_s21 = smov 96   ;;  %vm2022_vm2 = vmmov 0   ;;  %s2023_s16 = smov 32   ;;  %s2536_s2 = inlined_call_operand.vmem [shape: bf16[16,32], index: 2, kind: input, shape index: {}]   ;;  %s2537_s0 = inlined_call_operand.vmem [shape: bf16[128,16], index: 0, kind: input, shape index: {}, may-alias: {0,1}]   ;;  %s2538_s4 = inlined_call_operand.vmem [shape: bf16[64,64], index: 4, kind: input, shape index: {}]   ;;  %s2539_s6 = inlined_call_operand.vmem [shape: bf16[16,64], index: 6, kind: input, shape index: {}]   ;;  %s2540_s3 = inlined_call_operand.vmem [shape: bf16[16,32], index: 3, kind: input, shape index: {}]   ;;  %s2541_s1 = inlined_call_operand.vmem [shape: bf16[128,16], index: 1, kind: input, shape index: {}, may-alias: {0,1}]   ;;  %s2542_s5 = inlined_call_operand.vmem [shape: f32[1,64], index: 5, kind: input, shape index: {}]   ;;  %s2543_s7 = inlined_call_operand.vmem [shape: bf16[128,32], index: 7, kind: output, shape index: {0}]   ;;  %s2544_s8 = inlined_call_operand.vmem [shape: bf16[128,32], index: 8, kind: output, shape index: {1}]  }
   0x1   :  { %v1905_v0 = vld [vmem:[%s2536_s2] sm:$0xff]   ;;  %v1907_v2 = vld [vmem:[%s2537_s0 + $0x8] sm:$0xff]   ;;  %v1909_v5 = vld [vmem:[%s2537_s0 + $0x10] sm:$0xff]   ;;  %vm272_vm3 = vcmask 261120   ;;  %vm607_vm4 = vcmask 257024   ;;  %vm624_vm5 = vcmask 523520  }
   0x2   :  { %v1906_v1 = vld [vmem:[%s2537_s0] sm:$0xff]   ;;  %1769 = vmatprep.subr.bf16.mxu0 %v1905_v0  ;;  %v1911_v6 = vld [vmem:[%s2538_s4 + $0x8] sm:$0xff]   ;;  %v1910_v7 = vld [vmem:[%s2537_s0 + $0x18] sm:$0xff]  }
   0x3   :  { %1770 = vmatpush3.bf16.msra.mxu0 %v1905_v0  ;;  %1771 = vmatprep.mubr.msk.bf16.mxu0 %vm150_vm0, %v1906_v1  ;;  %v1908_v3 = vld [vmem:[%s2538_s4] sm:$0xff]   ;;  %v1914_v9 = vld [vmem:[%s2538_s4 + $0x10] sm:$0xff]   ;;  %v1917_v10 = vld [vmem:[%s2538_s4 + $0x18] sm:$0xff]  }
   0x4   :  { %1805 = vmatprep.subr.bf16.mxu0 %v2020_v4  ;;  %v1912_v8 = vld [vmem:[%s2537_s0 + $0x20] sm:$0xff]   ;;  %v1921_v14 = vld [vmem:[%s2541_s1 + $0x8] sm:$0xff]   ;;  %v1922_v15 = vld [vmem:[%s2541_s1 + $0x10] sm:$0xff]  }
   0x5   :  { %v1918_v11 = vld [vmem:[%s2539_s6] sm:$0xff]   ;;  %v1913_v16 = vld [vmem:[%s2537_s0 + $0x28] sm:$0xff]   ;;  %v1915_v17 = vld [vmem:[%s2537_s0 + $0x30] sm:$0xff]  }
   0x6   :  { %1772 = vmatmul.mubr.msk.bf16.vlgmr.msra.gmra.mrb[0].mxu0 %vm150_vm0, %v1907_v2  ;;  %v1919_v12 = vld [vmem:[%s2540_s3] sm:$0xff]   ;;  %78 = vst.msk [vmem:[#allocation4] sm:$0xff] %vm77_vm1, %v1918_v11  ;;  %v1923_v18 = vld [vmem:[%s2541_s1 + $0x18] sm:$0xff]   ;;  %v1925_v22 = vld [vmem:[%s2541_s1 + $0x28] sm:$0xff]  }
   0x7   :  { %1806 = vmatpush3.bf16.msra.mxu0 %v1908_v3  ;;  %1775 = vmatprep.mubr.msk.bf16.mxu0 %vm150_vm0, %v1909_v5  ;;  %v1920_v13 = vld [vmem:[%s2541_s1] sm:$0xff]   ;;  %v1916_v21 = vld [vmem:[%s2537_s0 + $0x38] sm:$0xff]   ;;  %v1926_v23 = vld [vmem:[%s2541_s1 + $0x30] sm:$0xff]  }
   0x8   :  { %1807 = vmatprep.subr.bf16.mxu0 %v2020_v4  ;;  %1787 = vmatprep.subr.bf16.mxu1 %v1919_v12  ;;  %v1924_v19 = vld [vmem:[%s2541_s1 + $0x20] sm:$0xff]   ;;  %v1927_v25 = vld [vmem:[%s2541_s1 + $0x38] sm:$0xff]  }
   0x9   :  { %1788 = vmatpush3.bf16.msra.mxu1 %v1919_v12  ;;  %1789 = vmatprep.mubr.msk.bf16.mxu1 %vm150_vm0, %v1920_v13  ;;  %v2146_v20 = vld [vmem:[%s2542_s5] ss:$0 sm:$0xff] }
   0xa   :  { %1817 = vmatprep.subr.bf16.mxu1 %v2020_v4  ;;  %359 = vrot.lane.b32.xlu0 %v2146_v20, %s2021_s21 }
   0xb   :  { %1808 = vmatpush3.bf16.msra.mxu0 %v1911_v6 }
   0xc   :  { %1809 = vmatprep.subr.bf16.mxu0 %v2020_v4  ;;  %1790 = vmatmul.mubr.msk.bf16.vlgmr.msra.gmra.mrb[0].mxu1 %vm150_vm0, %v1921_v14 }
   0xd   :  { %1793 = vmatprep.mubr.msk.bf16.mxu1 %vm150_vm0, %v1922_v15  ;;  %v499_v24 = vld [vmem:[#allocation4] sm:$0xff] }
   0xe   :  { %1776 = vmatmul.mubr.msk.bf16.gmra.mrb[4].mxu0 %vm150_vm0, %v1910_v7 }
   0xf   :  { %1779 = vmatprep.mubr.msk.bf16.mxu0 %vm150_vm0, %v1912_v8  ;;  %1810 = vmatpush3.bf16.msra.mxu0 %v1914_v9 }
  0x10   :  { %1811 = vmatprep.subr.bf16.mxu0 %v2020_v4 }
  0x13   :  { %1812 = vmatpush3.bf16.msra.mxu0 %v1917_v10 }
  0x14   :  { %1829 = vmatprep.subr.bf16.mxu0 %v2020_v4  ;;  %1794 = vmatmul.mubr.msk.bf16.gmra.mrb[4].mxu1 %vm150_vm0, %v1923_v18 }
  0x15   :  { %1797 = vmatprep.mubr.msk.bf16.mxu1 %vm150_vm0, %v1924_v19 }
  0x16   :  { %1780 = vmatmul.mubr.msk.bf16.gmra.mrb[8].mxu0 %vm150_vm0, %v1913_v16 }
  0x17   :  { %1783 = vmatprep.mubr.msk.bf16.mxu0 %vm150_vm0, %v1915_v17 }
  0x1c   :  { %1798 = vmatmul.mubr.msk.bf16.gmra.mrb[8].mxu1 %vm150_vm0, %v1925_v22 }
  0x1d   :  { %1801 = vmatprep.mubr.msk.bf16.mxu1 %vm150_vm0, %v1926_v23 }
  0x1e   :  { %1784 = vmatmul.mubr.msk.bf16.gmra.mrb[12].mxu0 %vm150_vm0, %v1916_v21 }
  0x1f   :  { %1813 = vmatprep.mubr.msk.bf16.mxu0 %vm2022_vm2, %v2020_v4 }
  0x24   :  { %1802 = vmatmul.mubr.msk.bf16.gmra.mrb[12].mxu1 %vm150_vm0, %v1927_v25 }
  0x25   :  { %1825 = vmatprep.mubr.msk.bf16.mxu1 %vm2022_vm2, %v2020_v4 }
  0x26   :  { %1814 = vmatmul.mubr.msk.bf16.vlgmr.msra.gmra.mrb[16].mxu0 %vm77_vm1, %v499_v24 }
  0x27   :  { %1837 = vmatprep.mubr.msk.bf16.mxu0 %vm2022_vm2, %v2020_v4 }
  0x7c   :  { %v2189_v42 = vpop.permute.xlu0 %359 }
  0xd9   :  { %v1773_v26 = vpop.f32.mrb[0].mxu0 }
  0xda   :  { %v218_v27 = vadd.f32 %v1773_v26, %v2146_v20  ;;  %v209_v28 = vpop.f32.mrb[1].mxu0 }
  0xdb   :  { %v210_v29 = vadd.f32 %v2146_v20, %v209_v28  ;;  %v1774_v30 = vpop.f32.mrb[2].mxu0  ;;  %v1928_v28 = vld [vmem:[%s2538_s4] sm:$0xff]  }
  0xdc   :  { %275 = vst.msk [vmem:[#allocation2 + $0x10] sm:$0xff] %vm272_vm3, %v218_v27  ;;  %v221_v31 = vadd.f32 %v1774_v30, %v2146_v20  ;;  %v212_v32 = vpop.f32.mrb[3].mxu0  ;;  %1818 = vmatpush3.bf16.msra.mxu1 %v1928_v28 }
  0xdd   :  { %273 = vst.msk [vmem:[#allocation2] sm:$0xff] %vm272_vm3, %v210_v29  ;;  %v213_v33 = vadd.f32 %v2146_v20, %v212_v32  ;;  %v1929_v32 = vld [vmem:[%s2538_s4 + $0x8] sm:$0xff]   ;;  %1819 = vmatprep.subr.bf16.mxu1 %v2020_v4 }
  0xde   :  { %276 = vst.msk [vmem:[#allocation2 + $0x18] sm:$0xff] %vm272_vm3, %v221_v31 }
  0xdf   :  { %274 = vst.msk [vmem:[#allocation2 + $0x8] sm:$0xff] %vm272_vm3, %v213_v33  ;;  %v1791_v43 = vpop.f32.mrb[0].mxu1 }
  0xe0   :  { %v420_v44 = vpop.f32.mrb[1].mxu1  ;;  %v429_v45 = vadd.f32 %v1791_v43, %v2189_v42  ;;  %1820 = vmatpush3.bf16.msra.mxu1 %v1929_v32 }
  0xe1   :  { %v1777_v34 = vpop.f32.mrb[4].mxu0  ;;  %v1792_v47 = vpop.f32.mrb[2].mxu1  ;;  %v421_v48 = vadd.f32 %v420_v44, %v2189_v42  ;;  %1821 = vmatprep.subr.bf16.mxu1 %v2020_v4 }
  0xe2   :  { %v234_v35 = vadd.f32 %v1777_v34, %v2146_v20  ;;  %v225_v36 = vpop.f32.mrb[5].mxu0  ;;  %v423_v51 = vpop.f32.mrb[3].mxu1  ;;  %485 = vst.msk [vmem:[#allocation3 + $0x10] sm:$0xff] %vm272_vm3, %v429_v45  ;;  %v432_v52 = vadd.f32 %v1792_v47, %v2189_v42 }
  0xe3   :  { %v226_v37 = vadd.f32 %v2146_v20, %v225_v36  ;;  %v1778_v38 = vpop.f32.mrb[6].mxu0  ;;  %v424_v55 = vadd.f32 %v423_v51, %v2189_v42  ;;  %483 = vst.msk [vmem:[#allocation3] sm:$0xff] %vm272_vm3, %v421_v48 }
  0xe4   :  { %279 = vst.msk [vmem:[#allocation2 + $0x30] sm:$0xff] %vm272_vm3, %v234_v35  ;;  %v237_v39 = vadd.f32 %v1778_v38, %v2146_v20  ;;  %v228_v40 = vpop.f32.mrb[7].mxu0  ;;  %486 = vst.msk [vmem:[#allocation3 + $0x18] sm:$0xff] %vm272_vm3, %v432_v52  ;;  %v577_v16 = vld [vmem:[#allocation2] sm:$0xff]  ;;  %v1930_v38 = vld [vmem:[%s2538_s4 + $0x10] sm:$0xff]  }
  0xe5   :  { %277 = vst.msk [vmem:[#allocation2 + $0x20] sm:$0xff] %vm272_vm3, %v226_v37  ;;  %v229_v41 = vadd.f32 %v2146_v20, %v228_v40  ;;  %484 = vst.msk [vmem:[#allocation3 + $0x8] sm:$0xff] %vm272_vm3, %v424_v55  ;;  %1822 = vmatpush3.bf16.msra.mxu1 %v1930_v38 }
  0xe6   :  { %280 = vst.msk [vmem:[#allocation2 + $0x38] sm:$0xff] %vm272_vm3, %v237_v39  ;;  %v578_v24 = vld [vmem:[#allocation2 + $0x8] sm:$0xff]  ;;  %1823 = vmatprep.subr.bf16.mxu1 %v2020_v4 }
  0xe7   :  { %278 = vst.msk [vmem:[#allocation2 + $0x28] sm:$0xff] %vm272_vm3, %v229_v41  ;;  %v1795_v59 = vpop.f32.mrb[4].mxu1 }
  0xe8   :  { %v445_v60 = vadd.f32 %v1795_v59, %v2189_v42  ;;  %v436_v61 = vpop.f32.mrb[5].mxu1  ;;  %v704_v59 = vld [vmem:[#allocation2 + $0x10] sm:$0xff] }
  0xe9   :  { %v1781_v46 = vpop.f32.mrb[8].mxu0  ;;  %v437_v63 = vadd.f32 %v436_v61, %v2189_v42  ;;  %v1796_v0 = vpop.f32.mrb[6].mxu1 }
  0xea   :  { %v250_v49 = vadd.f32 %v1781_v46, %v2146_v20  ;;  %v241_v50 = vpop.f32.mrb[9].mxu0  ;;  %489 = vst.msk [vmem:[#allocation3 + $0x30] sm:$0xff] %vm272_vm3, %v445_v60  ;;  %v448_v3 = vadd.f32 %v1796_v0, %v2189_v42  ;;  %v439_v5 = vpop.f32.mrb[7].mxu1 }
  0xeb   :  { %v242_v53 = vadd.f32 %v2146_v20, %v241_v50  ;;  %v1782_v54 = vpop.f32.mrb[10].mxu0  ;;  %487 = vst.msk [vmem:[#allocation3 + $0x20] sm:$0xff] %vm272_vm3, %v437_v63  ;;  %v440_v8 = vadd.f32 %v439_v5, %v2189_v42  ;;  %v1931_v50 = vld [vmem:[%s2538_s4 + $0x18] sm:$0xff]  }
  0xec   :  { %283 = vst.msk [vmem:[#allocation2 + $0x50] sm:$0xff] %vm272_vm3, %v250_v49  ;;  %v253_v56 = vadd.f32 %v1782_v54, %v2146_v20  ;;  %v244_v57 = vpop.f32.mrb[11].mxu0  ;;  %490 = vst.msk [vmem:[#allocation3 + $0x38] sm:$0xff] %vm272_vm3, %v448_v3  ;;  %1824 = vmatpush3.bf16.msra.mxu1 %v1931_v50  ;;  %v705_v63 = vld [vmem:[#allocation2 + $0x18] sm:$0xff]  ;;  %v1933_v3 = vld [vmem:[%s2538_s4 + $0x8] sm:$0xff]  }
  0xed   :  { %281 = vst.msk [vmem:[#allocation2 + $0x40] sm:$0xff] %vm272_vm3, %v242_v53  ;;  %v245_v58 = vadd.f32 %v2146_v20, %v244_v57  ;;  %488 = vst.msk [vmem:[#allocation3 + $0x28] sm:$0xff] %vm272_vm3, %v440_v8  ;;  %1841 = vmatprep.subr.bf16.mxu1 %v2020_v4 }
  0xee   :  { %284 = vst.msk [vmem:[#allocation2 + $0x58] sm:$0xff] %vm272_vm3, %v253_v56 }
  0xef   :  { %282 = vst.msk [vmem:[#allocation2 + $0x48] sm:$0xff] %vm272_vm3, %v245_v58  ;;  %v1799_v12 = vpop.f32.mrb[8].mxu1 }
  0xf0   :  { %v461_v13 = vadd.f32 %v1799_v12, %v2189_v42  ;;  %v452_v14 = vpop.f32.mrb[9].mxu1 }
  0xf1   :  { %v1785_v62 = vpop.f32.mrb[12].mxu0  ;;  %v453_v17 = vadd.f32 %v452_v14, %v2189_v42  ;;  %v1800_v18 = vpop.f32.mrb[10].mxu1 }
  0xf2   :  { %v266_v1 = vadd.f32 %v1785_v62, %v2146_v20  ;;  %v257_v2 = vpop.f32.mrb[13].mxu0  ;;  %493 = vst.msk [vmem:[#allocation3 + $0x50] sm:$0xff] %vm272_vm3, %v461_v13  ;;  %v455_v22 = vpop.f32.mrb[11].mxu1 }
  0xf3   :  { %v258_v6 = vadd.f32 %v2146_v20, %v257_v2  ;;  %v1786_v7 = vpop.f32.mrb[14].mxu0  ;;  %491 = vst.msk [vmem:[#allocation3 + $0x40] sm:$0xff] %vm272_vm3, %v453_v17  ;;  %v456_v25 = vadd.f32 %v455_v22, %v2189_v42  ;;  %v1932_v2 = vld [vmem:[%s2538_s4] sm:$0xff]   ;;  %v1935_v17 = vld [vmem:[%s2538_s4 + $0x18] sm:$0xff]  }
  0xf4   :  { %287 = vst.msk [vmem:[#allocation2 + $0x70] sm:$0xff] %vm272_vm3, %v266_v1  ;;  %v269_v9 = vadd.f32 %v1786_v7, %v2146_v20  ;;  %v260_v10 = vpop.f32.mrb[15].mxu0  ;;  %1830 = vmatpush3.bf16.msra.mxu0 %v1932_v2 }
  0xf5   :  { %285 = vst.msk [vmem:[#allocation2 + $0x60] sm:$0xff] %vm272_vm3, %v258_v6  ;;  %v261_v11 = vadd.f32 %v2146_v20, %v260_v10  ;;  %v464_v20 = vadd.f32 %v1800_v18, %v2189_v42  ;;  %492 = vst.msk [vmem:[#allocation3 + $0x48] sm:$0xff] %vm272_vm3, %v456_v25  ;;  %1831 = vmatprep.subr.bf16.mxu0 %v2020_v4 }
  0xf6   :  { %288 = vst.msk [vmem:[#allocation2 + $0x78] sm:$0xff] %vm272_vm3, %v269_v9 }
  0xf7   :  { %286 = vst.msk [vmem:[#allocation2 + $0x68] sm:$0xff] %vm272_vm3, %v261_v11  ;;  %494 = vst.msk [vmem:[#allocation3 + $0x58] sm:$0xff] %vm272_vm3, %v464_v20  ;;  %v1803_v29 = vpop.f32.mrb[12].mxu1 }
  0xf8   :  { %v477_v30 = vadd.f32 %v1803_v29, %v2189_v42  ;;  %v468_v31 = vpop.f32.mrb[13].mxu1  ;;  %1832 = vmatpush3.bf16.msra.mxu0 %v1933_v3 }
  0xf9   :  { %v570_v15 = vpop.f32.mrb[16].mxu0  ;;  %v469_v33 = vadd.f32 %v468_v31, %v2189_v42  ;;  %v1804_v34 = vpop.f32.mrb[14].mxu1  ;;  %1833 = vmatprep.subr.bf16.mxu0 %v2020_v4 }
  0xfa   :  { %v579_v19 = vadd.f32 %v577_v16, %v570_v15  ;;  %v1815_v21 = vpop.f32.mrb[17].mxu0  ;;  %589 = vrot.lane.b32.xlu0 %v570_v15, %s2021_s21  ;;  %497 = vst.msk [vmem:[#allocation3 + $0x70] sm:$0xff] %vm272_vm3, %v477_v30  ;;  %v480_v35 = vadd.f32 %v1804_v34, %v2189_v42  ;;  %v471_v36 = vpop.f32.mrb[15].mxu1  ;;  %v1934_v16 = vld [vmem:[%s2538_s4 + $0x10] sm:$0xff]   ;;  %v831_v30 = vld [vmem:[#allocation2 + $0x28] sm:$0xff] }
  0xfb   :  { %v573_v23 = vpop.f32.mrb[18].mxu0  ;;  %495 = vst.msk [vmem:[#allocation3 + $0x60] sm:$0xff] %vm272_vm3, %v469_v33  ;;  %v472_v37 = vadd.f32 %v471_v36, %v2189_v42  ;;  %v1936_v33 = vld [vmem:[%s2538_s4] sm:$0xff]   ;;  %v1937_v34 = vld [vmem:[%s2538_s4 + $0x8] sm:$0xff]  }
  0xfc   :  { %1956 = vtanh.f32 %v579_v19  ;;  %v580_v26 = vadd.f32 %v578_v24, %v573_v23  ;;  %591 = vrot.lane.b32.xlu1 %v573_v23, %s2021_s21  ;;  %v1816_v27 = vpop.f32.mrb[19].mxu0  ;;  %498 = vst.msk [vmem:[#allocation3 + $0x78] sm:$0xff] %vm272_vm3, %v480_v35  ;;  %1834 = vmatpush3.bf16.msra.mxu0 %v1934_v16 }
  0xfd   :  { %496 = vst.msk [vmem:[#allocation3 + $0x68] sm:$0xff] %vm272_vm3, %v472_v37  ;;  %1835 = vmatprep.subr.bf16.mxu0 %v2020_v4 }
  0xfe   :  { %1958 = vtanh.f32 %v580_v26  ;;  %v830_v26 = vld [vmem:[#allocation2 + $0x20] sm:$0xff] }
 0x100   :  { %1836 = vmatpush3.bf16.msra.mxu0 %v1935_v17 }
 0x101   :  { %v585_v44 = vld [vmem:[#allocation3 + $0x70] sm:$0xff]  ;;  %1853 = vmatprep.subr.bf16.mxu0 %v2020_v4 }
 0x102   :  { %v712_v10 = vld [vmem:[#allocation3 + $0x60] sm:$0xff] }
 0x103   :  { %v586_v47 = vld [vmem:[#allocation3 + $0x78] sm:$0xff] }
 0x104   :  { %v713_v13 = vld [vmem:[#allocation3 + $0x68] sm:$0xff] }
 0x106   :  { %v1957_v39 = vpop.eup %1956 }
 0x107   :  { %v1679_v40 = vpack.c.bf16 %v1957_v39, %v1957_v39 }
 0x108   :  { %v1959_v41 = vpop.eup %1958 }
 0x109   :  { %608 = vst.msk [vmem:[%s2543_s7] sm:$0xf] %vm607_vm4, %v1679_v40  ;;  %v1680_v42 = vpack.c.bf16 %v1959_v41, %v1959_v41  ;;  %v583_v43 = vpack.c.bf16 %v1959_v41, %v1957_v39  ;;  %v838_v40 = vld [vmem:[#allocation3 + $0x50] sm:$0xff] }
 0x10b   :  { %609 = vst.msk [vmem:[%s2543_s7 + $0x4] sm:$0xf] %vm607_vm4, %v1680_v42 }
 0x10c   :  { %620 = vst.msk [vmem:[#allocation4] sm:$0xff] %vm272_vm3, %v583_v43  ;;  %v839_v43 = vld [vmem:[#allocation3 + $0x58] sm:$0xff] }
 0x16c   :  { %v590_v45 = vpop.permute.xlu0 %589 }
 0x16d   :  { %v595_v46 = vadd.f32 %v590_v45, %v585_v44 }
 0x16e   :  { %v592_v48 = vpop.permute.xlu1 %591 }
 0x16f   :  { %1960 = vtanh.f32 %v595_v46  ;;  %v596_v49 = vadd.f32 %v592_v48, %v586_v47  ;;  %v1938_v46 = vld [vmem:[%s2538_s4 + $0x10] sm:$0xff]   ;;  %v1939_v47 = vld [vmem:[%s2538_s4 + $0x18] sm:$0xff]  }
 0x171   :  { %1962 = vtanh.f32 %v596_v49 }
 0x179   :  { %v1961_v51 = vpop.eup %1960 }
 0x17a   :  { %v1681_v52 = vpack.c.bf16 %v1961_v51, %v1961_v51 }
 0x17b   :  { %v1963_v53 = vpop.eup %1962 }
 0x17c   :  { %1588 = vst.msk [vmem:[%s2544_s8 + $0x38] sm:$0xf] %vm607_vm4, %v1681_v52  ;;  %v1682_v54 = vpack.c.bf16 %v1963_v53, %v1963_v53  ;;  %v599_v55 = vpack.c.bf16 %v1963_v53, %v1961_v51 }
 0x17e   :  { %1589 = vst.msk [vmem:[%s2544_s8 + $0x3c] sm:$0xf] %vm607_vm4, %v1682_v54  ;;  %621 = vrot.lane.b32.xlu1 %v599_v55, %s2023_s16 }
 0x1f0   :  { %v622_v56 = vpop.permute.xlu1 %621 }
 0x1f1   :  { %625 = vst.msk [vmem:[#allocation4] sm:$0xff] %vm624_vm5, %v622_v56  ;;  %v956_v56 = vld [vmem:[#allocation2 + $0x30] sm:$0xff] }
 0x1f8   :  { %v626_v57 = vld [vmem:[#allocation4] sm:$0xff] }
 0x1f9   :  { %1826 = vmatmul.mubr.msk.bf16.vlgmr.msra.gmra.mrb[16].mxu1 %vm77_vm1, %v626_v57 }
 0x1fa   :  { %1849 = vmatprep.mubr.msk.bf16.mxu1 %vm2022_vm2, %v2020_v4  ;;  %1842 = vmatpush3.bf16.msra.mxu1 %v1936_v33 }
 0x1fb   :  { %1843 = vmatprep.subr.bf16.mxu1 %v2020_v4 }
 0x1fe   :  { %1844 = vmatpush3.bf16.msra.mxu1 %v1937_v34 }
 0x1ff   :  { %1845 = vmatprep.subr.bf16.mxu1 %v2020_v4 }
 0x202   :  { %1846 = vmatpush3.bf16.msra.mxu1 %v1938_v46 }
 0x203   :  { %1847 = vmatprep.subr.bf16.mxu1 %v2020_v4 }
 0x206   :  { %1848 = vmatpush3.bf16.msra.mxu1 %v1939_v47 }
 0x207   :  { %1865 = vmatprep.subr.bf16.mxu1 %v2020_v4 }
 0x2cc   :  { %v696_v58 = vpop.f32.mrb[16].mxu1 }
 0x2cd   :  { %v706_v60 = vadd.f32 %v704_v59, %v696_v58  ;;  %716 = vrot.lane.b32.xlu0 %v696_v58, %s2021_s21  ;;  %v1827_v61 = vpop.f32.mrb[17].mxu1 }
 0x2ce   :  { %v699_v62 = vpop.f32.mrb[18].mxu1 }
 0x2cf   :  { %1964 = vtanh.f32 %v706_v60  ;;  %v707_v0 = vadd.f32 %v705_v63, %v699_v62  ;;  %718 = vrot.lane.b32.xlu1 %v699_v62, %s2021_s21  ;;  %v1828_v1 = vpop.f32.mrb[19].mxu1  ;;  %v957_v60 = vld [vmem:[#allocation2 + $0x38] sm:$0xff]  ;;  %v1940_v63 = vld [vmem:[%s2538_s4] sm:$0xff]  }
 0x2d1   :  { %1966 = vtanh.f32 %v707_v0  ;;  %v1941_v0 = vld [vmem:[%s2538_s4 + $0x8] sm:$0xff]  }
 0x2d9   :  { %v1965_v5 = vpop.eup %1964 }
 0x2da   :  { %v1683_v6 = vpack.c.bf16 %v1965_v5, %v1965_v5 }
 0x2db   :  { %v1967_v7 = vpop.eup %1966 }
 0x2dc   :  { %1597 = vst.msk [vmem:[%s2543_s7 + $0x8] sm:$0xf] %vm607_vm4, %v1683_v6  ;;  %v1684_v8 = vpack.c.bf16 %v1967_v7, %v1967_v7  ;;  %v710_v9 = vpack.c.bf16 %v1967_v7, %v1965_v5  ;;  %v964_v7 = vld [vmem:[#allocation3 + $0x40] sm:$0xff] }
 0x2de   :  { %1598 = vst.msk [vmem:[%s2543_s7 + $0xc] sm:$0xf] %vm607_vm4, %v1684_v8 }
 0x2df   :  { %747 = vst.msk [vmem:[#allocation4] sm:$0xff] %vm272_vm3, %v710_v9 }
 0x33f   :  { %v717_v11 = vpop.permute.xlu0 %716 }
 0x340   :  { %v722_v12 = vadd.f32 %v717_v11, %v712_v10  ;;  %v965_v10 = vld [vmem:[#allocation3 + $0x48] sm:$0xff] }
 0x341   :  { %v719_v14 = vpop.permute.xlu1 %718 }
 0x342   :  { %1968 = vtanh.f32 %v722_v12  ;;  %v723_v15 = vadd.f32 %v719_v14, %v713_v13  ;;  %v1942_v13 = vld [vmem:[%s2538_s4 + $0x10] sm:$0xff]   ;;  %v1943_v14 = vld [vmem:[%s2538_s4 + $0x18] sm:$0xff]  }
 0x344   :  { %1970 = vtanh.f32 %v723_v15 }
 0x34c   :  { %v1969_v18 = vpop.eup %1968 }
 0x34d   :  { %v1685_v19 = vpack.c.bf16 %v1969_v18, %v1969_v18 }
 0x34e   :  { %v1971_v21 = vpop.eup %1970 }
 0x34f   :  { %1601 = vst.msk [vmem:[%s2544_s8 + $0x30] sm:$0xf] %vm607_vm4, %v1685_v19  ;;  %v1686_v20 = vpack.c.bf16 %v1971_v21, %v1971_v21  ;;  %v726_v22 = vpack.c.bf16 %v1971_v21, %v1969_v18 }
 0x351   :  { %1602 = vst.msk [vmem:[%s2544_s8 + $0x34] sm:$0xf] %vm607_vm4, %v1686_v20  ;;  %748 = vrot.lane.b32.xlu0 %v726_v22, %s2023_s16 }
 0x3c3   :  { %v749_v23 = vpop.permute.xlu0 %748 }
 0x3c4   :  { %751 = vst.msk [vmem:[#allocation4] sm:$0xff] %vm624_vm5, %v749_v23  ;;  %v1082_v23 = vld [vmem:[#allocation2 + $0x40] sm:$0xff] }
 0x3cb   :  { %v752_v24 = vld [vmem:[#allocation4] sm:$0xff] }
 0x3cc   :  { %1838 = vmatmul.mubr.msk.bf16.vlgmr.msra.gmra.mrb[20].mxu0 %vm77_vm1, %v752_v24 }
 0x3cd   :  { %1861 = vmatprep.mubr.msk.bf16.mxu0 %vm2022_vm2, %v2020_v4  ;;  %1854 = vmatpush3.bf16.msra.mxu0 %v1940_v63 }
 0x3ce   :  { %1855 = vmatprep.subr.bf16.mxu0 %v2020_v4 }
 0x3d1   :  { %1856 = vmatpush3.bf16.msra.mxu0 %v1941_v0 }
 0x3d2   :  { %1857 = vmatprep.subr.bf16.mxu0 %v2020_v4 }
 0x3d5   :  { %1858 = vmatpush3.bf16.msra.mxu0 %v1942_v13 }
 0x3d6   :  { %1859 = vmatprep.subr.bf16.mxu0 %v2020_v4 }
 0x3d9   :  { %1860 = vmatpush3.bf16.msra.mxu0 %v1943_v14 }
 0x3da   :  { %1877 = vmatprep.subr.bf16.mxu0 %v2020_v4 }
 0x49f   :  { %v822_v25 = vpop.f32.mrb[20].mxu0 }
 0x4a0   :  { %v832_v27 = vadd.f32 %v830_v26, %v822_v25  ;;  %842 = vrot.lane.b32.xlu1 %v822_v25, %s2021_s21  ;;  %v1839_v28 = vpop.f32.mrb[21].mxu0 }
 0x4a1   :  { %v825_v29 = vpop.f32.mrb[22].mxu0 }
 0x4a2   :  { %1972 = vtanh.f32 %v832_v27  ;;  %v833_v31 = vadd.f32 %v831_v30, %v825_v29  ;;  %844 = vrot.lane.b32.xlu0 %v825_v29, %s2021_s21  ;;  %v1840_v32 = vpop.f32.mrb[23].mxu0  ;;  %v1083_v27 = vld [vmem:[#allocation2 + $0x48] sm:$0xff]  ;;  %v1944_v30 = vld [vmem:[%s2538_s4] sm:$0xff]  }
 0x4a4   :  { %1974 = vtanh.f32 %v833_v31  ;;  %v1945_v31 = vld [vmem:[%s2538_s4 + $0x8] sm:$0xff]  }
 0x4ac   :  { %v1973_v35 = vpop.eup %1972 }
 0x4ad   :  { %v1687_v36 = vpack.c.bf16 %v1973_v35, %v1973_v35 }
 0x4ae   :  { %v1975_v37 = vpop.eup %1974 }
 0x4af   :  { %1610 = vst.msk [vmem:[%s2543_s7 + $0x10] sm:$0xf] %vm607_vm4, %v1687_v36  ;;  %v1688_v38 = vpack.c.bf16 %v1975_v37, %v1975_v37  ;;  %v836_v39 = vpack.c.bf16 %v1975_v37, %v1973_v35  ;;  %v1090_v37 = vld [vmem:[#allocation3 + $0x30] sm:$0xff] }
 0x4b1   :  { %1611 = vst.msk [vmem:[%s2543_s7 + $0x14] sm:$0xf] %vm607_vm4, %v1688_v38 }
 0x4b2   :  { %873 = vst.msk [vmem:[#allocation4] sm:$0xff] %vm272_vm3, %v836_v39 }
 0x512   :  { %v843_v41 = vpop.permute.xlu1 %842 }
 0x513   :  { %v848_v42 = vadd.f32 %v843_v41, %v838_v40  ;;  %v1091_v40 = vld [vmem:[#allocation3 + $0x38] sm:$0xff] }
 0x514   :  { %v845_v44 = vpop.permute.xlu0 %844 }
 0x515   :  { %1976 = vtanh.f32 %v848_v42  ;;  %v849_v45 = vadd.f32 %v845_v44, %v839_v43  ;;  %v1946_v43 = vld [vmem:[%s2538_s4 + $0x10] sm:$0xff]   ;;  %v1947_v44 = vld [vmem:[%s2538_s4 + $0x18] sm:$0xff]  }
 0x517   :  { %1978 = vtanh.f32 %v849_v45 }
 0x51f   :  { %v1977_v48 = vpop.eup %1976 }
 0x520   :  { %v1689_v49 = vpack.c.bf16 %v1977_v48, %v1977_v48 }
 0x521   :  { %v1979_v50 = vpop.eup %1978 }
 0x522   :  { %1614 = vst.msk [vmem:[%s2544_s8 + $0x28] sm:$0xf] %vm607_vm4, %v1689_v49  ;;  %v1690_v51 = vpack.c.bf16 %v1979_v50, %v1979_v50  ;;  %v852_v52 = vpack.c.bf16 %v1979_v50, %v1977_v48 }
 0x524   :  { %1615 = vst.msk [vmem:[%s2544_s8 + $0x2c] sm:$0xf] %vm607_vm4, %v1690_v51  ;;  %874 = vrot.lane.b32.xlu1 %v852_v52, %s2023_s16 }
 0x596   :  { %v875_v53 = vpop.permute.xlu1 %874 }
 0x597   :  { %877 = vst.msk [vmem:[#allocation4] sm:$0xff] %vm624_vm5, %v875_v53  ;;  %v1208_v53 = vld [vmem:[#allocation2 + $0x50] sm:$0xff] }
 0x59e   :  { %v878_v54 = vld [vmem:[#allocation4] sm:$0xff] }
 0x59f   :  { %1850 = vmatmul.mubr.msk.bf16.vlgmr.msra.gmra.mrb[20].mxu1 %vm77_vm1, %v878_v54 }
 0x5a0   :  { %1873 = vmatprep.mubr.msk.bf16.mxu1 %vm2022_vm2, %v2020_v4  ;;  %1866 = vmatpush3.bf16.msra.mxu1 %v1944_v30 }
 0x5a1   :  { %1867 = vmatprep.subr.bf16.mxu1 %v2020_v4 }
 0x5a4   :  { %1868 = vmatpush3.bf16.msra.mxu1 %v1945_v31 }
 0x5a5   :  { %1869 = vmatprep.subr.bf16.mxu1 %v2020_v4 }
 0x5a8   :  { %1870 = vmatpush3.bf16.msra.mxu1 %v1946_v43 }
 0x5a9   :  { %1871 = vmatprep.subr.bf16.mxu1 %v2020_v4 }
 0x5ac   :  { %1872 = vmatpush3.bf16.msra.mxu1 %v1947_v44 }
 0x5ad   :  { %1889 = vmatprep.subr.bf16.mxu1 %v2020_v4 }
 0x672   :  { %v948_v55 = vpop.f32.mrb[20].mxu1 }
 0x673   :  { %v958_v57 = vadd.f32 %v956_v56, %v948_v55  ;;  %968 = vrot.lane.b32.xlu0 %v948_v55, %s2021_s21  ;;  %v1851_v58 = vpop.f32.mrb[21].mxu1 }
 0x674   :  { %v951_v59 = vpop.f32.mrb[22].mxu1 }
 0x675   :  { %1980 = vtanh.f32 %v958_v57  ;;  %v959_v61 = vadd.f32 %v957_v60, %v951_v59  ;;  %970 = vrot.lane.b32.xlu1 %v951_v59, %s2021_s21  ;;  %v1852_v62 = vpop.f32.mrb[23].mxu1  ;;  %v1209_v57 = vld [vmem:[#allocation2 + $0x58] sm:$0xff]  ;;  %v1948_v60 = vld [vmem:[%s2538_s4] sm:$0xff]  }
 0x677   :  { %1982 = vtanh.f32 %v959_v61  ;;  %v1949_v61 = vld [vmem:[%s2538_s4 + $0x8] sm:$0xff]  }
 0x67f   :  { %v1981_v1 = vpop.eup %1980 }
 0x680   :  { %v1691_v2 = vpack.c.bf16 %v1981_v1, %v1981_v1 }
 0x681   :  { %v1983_v3 = vpop.eup %1982 }
 0x682   :  { %1623 = vst.msk [vmem:[%s2543_s7 + $0x18] sm:$0xf] %vm607_vm4, %v1691_v2  ;;  %v1692_v5 = vpack.c.bf16 %v1983_v3, %v1983_v3  ;;  %v962_v6 = vpack.c.bf16 %v1983_v3, %v1981_v1  ;;  %v1216_v3 = vld [vmem:[#allocation3 + $0x20] sm:$0xff] }
 0x684   :  { %1624 = vst.msk [vmem:[%s2543_s7 + $0x1c] sm:$0xf] %vm607_vm4, %v1692_v5 }
 0x685   :  { %999 = vst.msk [vmem:[#allocation4] sm:$0xff] %vm272_vm3, %v962_v6 }
 0x6e5   :  { %v969_v8 = vpop.permute.xlu0 %968 }
 0x6e6   :  { %v974_v9 = vadd.f32 %v969_v8, %v964_v7  ;;  %v1217_v7 = vld [vmem:[#allocation3 + $0x28] sm:$0xff] }
 0x6e7   :  { %v971_v11 = vpop.permute.xlu1 %970 }
 0x6e8   :  { %1984 = vtanh.f32 %v974_v9  ;;  %v975_v12 = vadd.f32 %v971_v11, %v965_v10  ;;  %v1950_v10 = vld [vmem:[%s2538_s4 + $0x10] sm:$0xff]   ;;  %v1951_v11 = vld [vmem:[%s2538_s4 + $0x18] sm:$0xff]  }
 0x6ea   :  { %1986 = vtanh.f32 %v975_v12 }
 0x6f2   :  { %v1985_v15 = vpop.eup %1984 }
 0x6f3   :  { %v1693_v16 = vpack.c.bf16 %v1985_v15, %v1985_v15 }
 0x6f4   :  { %v1987_v17 = vpop.eup %1986 }
 0x6f5   :  { %1627 = vst.msk [vmem:[%s2544_s8 + $0x20] sm:$0xf] %vm607_vm4, %v1693_v16  ;;  %v1694_v18 = vpack.c.bf16 %v1987_v17, %v1987_v17  ;;  %v978_v19 = vpack.c.bf16 %v1987_v17, %v1985_v15 }
 0x6f7   :  { %1628 = vst.msk [vmem:[%s2544_s8 + $0x24] sm:$0xf] %vm607_vm4, %v1694_v18  ;;  %1000 = vrot.lane.b32.xlu0 %v978_v19, %s2023_s16 }
 0x769   :  { %v1001_v21 = vpop.permute.xlu0 %1000 }
 0x76a   :  { %1003 = vst.msk [vmem:[#allocation4] sm:$0xff] %vm624_vm5, %v1001_v21  ;;  %v1334_v21 = vld [vmem:[#allocation2 + $0x60] sm:$0xff] }
 0x771   :  { %v1004_v20 = vld [vmem:[#allocation4] sm:$0xff] }
 0x772   :  { %1862 = vmatmul.mubr.msk.bf16.vlgmr.msra.gmra.mrb[24].mxu0 %vm77_vm1, %v1004_v20 }
 0x773   :  { %1885 = vmatprep.mubr.msk.bf16.mxu0 %vm2022_vm2, %v2020_v4  ;;  %1878 = vmatpush3.bf16.msra.mxu0 %v1948_v60 }
 0x774   :  { %1879 = vmatprep.subr.bf16.mxu0 %v2020_v4 }
 0x777   :  { %1880 = vmatpush3.bf16.msra.mxu0 %v1949_v61  ;;  %v1467_v61 = vld [vmem:[#allocation3] sm:$0xff] }
 0x778   :  { %1881 = vmatprep.subr.bf16.mxu0 %v2020_v4 }
 0x77b   :  { %1882 = vmatpush3.bf16.msra.mxu0 %v1950_v10 }
 0x77c   :  { %1883 = vmatprep.subr.bf16.mxu0 %v2020_v4 }
 0x77f   :  { %1884 = vmatpush3.bf16.msra.mxu0 %v1951_v11 }
 0x845   :  { %v1074_v22 = vpop.f32.mrb[24].mxu0 }
 0x846   :  { %v1084_v24 = vadd.f32 %v1082_v23, %v1074_v22  ;;  %1094 = vrot.lane.b32.xlu1 %v1074_v22, %s2021_s21  ;;  %v1863_v25 = vpop.f32.mrb[25].mxu0 }
 0x847   :  { %v1077_v26 = vpop.f32.mrb[26].mxu0 }
 0x848   :  { %1988 = vtanh.f32 %v1084_v24  ;;  %v1085_v28 = vadd.f32 %v1083_v27, %v1077_v26  ;;  %1096 = vrot.lane.b32.xlu0 %v1077_v26, %s2021_s21  ;;  %v1864_v29 = vpop.f32.mrb[27].mxu0  ;;  %v1335_v24 = vld [vmem:[#allocation2 + $0x68] sm:$0xff]  ;;  %v1952_v27 = vld [vmem:[%s2538_s4] sm:$0xff]  }
 0x84a   :  { %1990 = vtanh.f32 %v1085_v28  ;;  %v1953_v28 = vld [vmem:[%s2538_s4 + $0x8] sm:$0xff]  }
 0x852   :  { %v1989_v32 = vpop.eup %1988 }
 0x853   :  { %v1695_v33 = vpack.c.bf16 %v1989_v32, %v1989_v32 }
 0x854   :  { %v1991_v34 = vpop.eup %1990 }
 0x855   :  { %1636 = vst.msk [vmem:[%s2543_s7 + $0x20] sm:$0xf] %vm607_vm4, %v1695_v33  ;;  %v1696_v35 = vpack.c.bf16 %v1991_v34, %v1991_v34  ;;  %v1088_v36 = vpack.c.bf16 %v1991_v34, %v1989_v32  ;;  %v1342_v34 = vld [vmem:[#allocation3 + $0x10] sm:$0xff] }
 0x857   :  { %1637 = vst.msk [vmem:[%s2543_s7 + $0x24] sm:$0xf] %vm607_vm4, %v1696_v35 }
 0x858   :  { %1125 = vst.msk [vmem:[#allocation4] sm:$0xff] %vm272_vm3, %v1088_v36 }
 0x8b8   :  { %v1095_v38 = vpop.permute.xlu1 %1094 }
 0x8b9   :  { %v1100_v39 = vadd.f32 %v1095_v38, %v1090_v37  ;;  %v1343_v37 = vld [vmem:[#allocation3 + $0x18] sm:$0xff] }
 0x8ba   :  { %v1097_v41 = vpop.permute.xlu0 %1096 }
 0x8bb   :  { %1992 = vtanh.f32 %v1100_v39  ;;  %v1101_v42 = vadd.f32 %v1097_v41, %v1091_v40  ;;  %v1954_v40 = vld [vmem:[%s2538_s4 + $0x10] sm:$0xff]   ;;  %v1955_v41 = vld [vmem:[%s2538_s4 + $0x18] sm:$0xff]  }
 0x8bd   :  { %1994 = vtanh.f32 %v1101_v42 }
 0x8c5   :  { %v1993_v45 = vpop.eup %1992 }
 0x8c6   :  { %v1697_v46 = vpack.c.bf16 %v1993_v45, %v1993_v45 }
 0x8c7   :  { %v1995_v47 = vpop.eup %1994 }
 0x8c8   :  { %1640 = vst.msk [vmem:[%s2544_s8 + $0x18] sm:$0xf] %vm607_vm4, %v1697_v46  ;;  %v1698_v48 = vpack.c.bf16 %v1995_v47, %v1995_v47  ;;  %v1104_v49 = vpack.c.bf16 %v1995_v47, %v1993_v45 }
 0x8ca   :  { %1641 = vst.msk [vmem:[%s2544_s8 + $0x1c] sm:$0xf] %vm607_vm4, %v1698_v48  ;;  %1126 = vrot.lane.b32.xlu1 %v1104_v49, %s2023_s16  ;;  %v1460_v49 = vld [vmem:[#allocation2 + $0x70] sm:$0xff] }
 0x93c   :  { %v1127_v50 = vpop.permute.xlu1 %1126 }
 0x93d   :  { %1129 = vst.msk [vmem:[#allocation4] sm:$0xff] %vm624_vm5, %v1127_v50 }
 0x944   :  { %v1130_v51 = vld [vmem:[#allocation4] sm:$0xff] }
 0x945   :  { %1874 = vmatmul.mubr.msk.bf16.vlgmr.msra.gmra.mrb[24].mxu1 %vm77_vm1, %v1130_v51 }
 0x946   :  { %1897 = vmatprep.mubr.msk.bf16.mxu1 %vm2022_vm2, %v2020_v4  ;;  %1890 = vmatpush3.bf16.msra.mxu1 %v1952_v27 }
 0x947   :  { %1891 = vmatprep.subr.bf16.mxu1 %v2020_v4 }
 0x94a   :  { %1892 = vmatpush3.bf16.msra.mxu1 %v1953_v28 }
 0x94b   :  { %1893 = vmatprep.subr.bf16.mxu1 %v2020_v4 }
 0x94e   :  { %1894 = vmatpush3.bf16.msra.mxu1 %v1954_v40 }
 0x94f   :  { %1895 = vmatprep.subr.bf16.mxu1 %v2020_v4 }
 0x952   :  { %1896 = vmatpush3.bf16.msra.mxu1 %v1955_v41 }
 0xa18   :  { %v1200_v52 = vpop.f32.mrb[24].mxu1 }
 0xa19   :  { %v1210_v54 = vadd.f32 %v1208_v53, %v1200_v52  ;;  %1220 = vrot.lane.b32.xlu0 %v1200_v52, %s2021_s21  ;;  %v1875_v55 = vpop.f32.mrb[25].mxu1  ;;  %v1461_v53 = vld [vmem:[#allocation2 + $0x78] sm:$0xff] }
 0xa1a   :  { %v1203_v56 = vpop.f32.mrb[26].mxu1 }
 0xa1b   :  { %1996 = vtanh.f32 %v1210_v54  ;;  %v1211_v58 = vadd.f32 %v1209_v57, %v1203_v56  ;;  %1222 = vrot.lane.b32.xlu1 %v1203_v56, %s2021_s21  ;;  %v1876_v59 = vpop.f32.mrb[27].mxu1 }
 0xa1d   :  { %1998 = vtanh.f32 %v1211_v58 }
 0xa25   :  { %v1997_v62 = vpop.eup %1996 }
 0xa26   :  { %v1699_v63 = vpack.c.bf16 %v1997_v62, %v1997_v62 }
 0xa27   :  { %v1999_v0 = vpop.eup %1998 }
 0xa28   :  { %1649 = vst.msk [vmem:[%s2543_s7 + $0x28] sm:$0xf] %vm607_vm4, %v1699_v63  ;;  %v1700_v1 = vpack.c.bf16 %v1999_v0, %v1999_v0  ;;  %v1214_v2 = vpack.c.bf16 %v1999_v0, %v1997_v62  ;;  %v1468_v0 = vld [vmem:[#allocation3 + $0x8] sm:$0xff] }
 0xa2a   :  { %1650 = vst.msk [vmem:[%s2543_s7 + $0x2c] sm:$0xf] %vm607_vm4, %v1700_v1 }
 0xa2b   :  { %1251 = vst.msk [vmem:[#allocation4] sm:$0xff] %vm272_vm3, %v1214_v2 }
 0xa8b   :  { %v1221_v5 = vpop.permute.xlu0 %1220 }
 0xa8c   :  { %v1226_v6 = vadd.f32 %v1221_v5, %v1216_v3 }
 0xa8d   :  { %v1223_v8 = vpop.permute.xlu1 %1222 }
 0xa8e   :  { %2000 = vtanh.f32 %v1226_v6  ;;  %v1227_v9 = vadd.f32 %v1223_v8, %v1217_v7 }
 0xa90   :  { %2002 = vtanh.f32 %v1227_v9 }
 0xa98   :  { %v2001_v12 = vpop.eup %2000 }
 0xa99   :  { %v1701_v13 = vpack.c.bf16 %v2001_v12, %v2001_v12 }
 0xa9a   :  { %v2003_v14 = vpop.eup %2002 }
 0xa9b   :  { %1653 = vst.msk [vmem:[%s2544_s8 + $0x10] sm:$0xf] %vm607_vm4, %v1701_v13  ;;  %v1702_v15 = vpack.c.bf16 %v2003_v14, %v2003_v14  ;;  %v1230_v16 = vpack.c.bf16 %v2003_v14, %v2001_v12 }
 0xa9d   :  { %1654 = vst.msk [vmem:[%s2544_s8 + $0x14] sm:$0xf] %vm607_vm4, %v1702_v15  ;;  %1252 = vrot.lane.b32.xlu0 %v1230_v16, %s2023_s16 }
 0xb0f   :  { %v1253_v17 = vpop.permute.xlu0 %1252 }
 0xb10   :  { %1255 = vst.msk [vmem:[#allocation4] sm:$0xff] %vm624_vm5, %v1253_v17 }
 0xb17   :  { %v1256_v18 = vld [vmem:[#allocation4] sm:$0xff] }
 0xb18   :  { %1886 = vmatmul.mubr.msk.bf16.vlgmr.msra.gmra.mrb[28].mxu0 %vm77_vm1, %v1256_v18 }
 0xbeb   :  { %v1326_v19 = vpop.f32.mrb[28].mxu0 }
 0xbec   :  { %v1336_v20 = vadd.f32 %v1334_v21, %v1326_v19  ;;  %1346 = vrot.lane.b32.xlu1 %v1326_v19, %s2021_s21  ;;  %v1887_v22 = vpop.f32.mrb[29].mxu0 }
 0xbed   :  { %v1329_v23 = vpop.f32.mrb[30].mxu0 }
 0xbee   :  { %2004 = vtanh.f32 %v1336_v20  ;;  %v1337_v25 = vadd.f32 %v1335_v24, %v1329_v23  ;;  %1348 = vrot.lane.b32.xlu0 %v1329_v23, %s2021_s21  ;;  %v1888_v26 = vpop.f32.mrb[31].mxu0 }
 0xbf0   :  { %2006 = vtanh.f32 %v1337_v25 }
 0xbf8   :  { %v2005_v29 = vpop.eup %2004 }
 0xbf9   :  { %v1703_v30 = vpack.c.bf16 %v2005_v29, %v2005_v29 }
 0xbfa   :  { %v2007_v31 = vpop.eup %2006 }
 0xbfb   :  { %1662 = vst.msk [vmem:[%s2543_s7 + $0x30] sm:$0xf] %vm607_vm4, %v1703_v30  ;;  %v1704_v32 = vpack.c.bf16 %v2007_v31, %v2007_v31  ;;  %v1340_v33 = vpack.c.bf16 %v2007_v31, %v2005_v29 }
 0xbfd   :  { %1663 = vst.msk [vmem:[%s2543_s7 + $0x34] sm:$0xf] %vm607_vm4, %v1704_v32 }
 0xbfe   :  { %1377 = vst.msk [vmem:[#allocation4] sm:$0xff] %vm272_vm3, %v1340_v33 }
 0xc5e   :  { %v1347_v35 = vpop.permute.xlu1 %1346 }
 0xc5f   :  { %v1352_v36 = vadd.f32 %v1347_v35, %v1342_v34 }
 0xc60   :  { %v1349_v38 = vpop.permute.xlu0 %1348 }
 0xc61   :  { %2008 = vtanh.f32 %v1352_v36  ;;  %v1353_v39 = vadd.f32 %v1349_v38, %v1343_v37 }
 0xc63   :  { %2010 = vtanh.f32 %v1353_v39 }
 0xc6b   :  { %v2009_v42 = vpop.eup %2008 }
 0xc6c   :  { %v1705_v43 = vpack.c.bf16 %v2009_v42, %v2009_v42 }
 0xc6d   :  { %v2011_v44 = vpop.eup %2010 }
 0xc6e   :  { %1666 = vst.msk [vmem:[%s2544_s8 + $0x8] sm:$0xf] %vm607_vm4, %v1705_v43  ;;  %v1706_v45 = vpack.c.bf16 %v2011_v44, %v2011_v44  ;;  %v1356_v46 = vpack.c.bf16 %v2011_v44, %v2009_v42 }
 0xc70   :  { %1667 = vst.msk [vmem:[%s2544_s8 + $0xc] sm:$0xf] %vm607_vm4, %v1706_v45  ;;  %1378 = vrot.lane.b32.xlu1 %v1356_v46, %s2023_s16 }
 0xce2   :  { %v1379_v47 = vpop.permute.xlu1 %1378 }
 0xce3   :  { %1381 = vst.msk [vmem:[#allocation4] sm:$0xff] %vm624_vm5, %v1379_v47 }
 0xcea   :  { %v1382_v4 = vld [vmem:[#allocation4] sm:$0xff] }
 0xceb   :  { %1898 = vmatmul.mubr.msk.bf16.vlgmr.msra.gmra.mrb[28].mxu1 %vm77_vm1, %v1382_v4 }
 0xdbe   :  { %v1452_v48 = vpop.f32.mrb[28].mxu1 }
 0xdbf   :  { %v1462_v50 = vadd.f32 %v1460_v49, %v1452_v48  ;;  %1471 = vrot.lane.b32.xlu0 %v1452_v48, %s2021_s21  ;;  %v1899_v51 = vpop.f32.mrb[29].mxu1 }
 0xdc0   :  { %v1455_v52 = vpop.f32.mrb[30].mxu1 }
 0xdc1   :  { %2012 = vtanh.f32 %v1462_v50  ;;  %v1463_v54 = vadd.f32 %v1461_v53, %v1455_v52  ;;  %1473 = vrot.lane.b32.xlu1 %v1455_v52, %s2021_s21  ;;  %v1900_v55 = vpop.f32.mrb[31].mxu1 }
 0xdc3   :  { %2014 = vtanh.f32 %v1463_v54 }
 0xdcb   :  { %v2013_v56 = vpop.eup %2012 }
 0xdcc   :  { %v1707_v57 = vpack.c.bf16 %v2013_v56, %v2013_v56 }
 0xdcd   :  { %v2015_v58 = vpop.eup %2014 }
 0xdce   :  { %1675 = vst.msk [vmem:[%s2543_s7 + $0x38] sm:$0xf] %vm607_vm4, %v1707_v57  ;;  %v1708_v59 = vpack.c.bf16 %v2015_v58, %v2015_v58  ;;  %v1466_v60 = vpack.c.bf16 %v2015_v58, %v2013_v56 }
 0xdd0   :  { %1676 = vst.msk [vmem:[%s2543_s7 + $0x3c] sm:$0xf] %vm607_vm4, %v1708_v59 }
 0xdd1   :  { %1501 = vst.msk [vmem:[#allocation4] sm:$0xff] %vm272_vm3, %v1466_v60 }
 0xe31   :  { %v1472_v62 = vpop.permute.xlu0 %1471 }
 0xe32   :  { %v1477_v63 = vadd.f32 %v1472_v62, %v1467_v61 }
 0xe33   :  { %v1474_v1 = vpop.permute.xlu1 %1473 }
 0xe34   :  { %2016 = vtanh.f32 %v1477_v63  ;;  %v1478_v2 = vadd.f32 %v1474_v1, %v1468_v0 }
 0xe36   :  { %2018 = vtanh.f32 %v1478_v2 }
 0xe3e   :  { %v2017_v3 = vpop.eup %2016 }
 0xe3f   :  { %v1709_v5 = vpack.c.bf16 %v2017_v3, %v2017_v3 }
 0xe40   :  { %v2019_v6 = vpop.eup %2018 }
 0xe41   :  { %1499 = vst.msk [vmem:[%s2544_s8] sm:$0xf] %vm607_vm4, %v1709_v5  ;;  %v1710_v7 = vpack.c.bf16 %v2019_v6, %v2019_v6  ;;  %v1481_v8 = vpack.c.bf16 %v2019_v6, %v2017_v3 }
 0xe43   :  { %1500 = vst.msk [vmem:[%s2544_s8 + $0x4] sm:$0xf] %vm607_vm4, %v1710_v7  ;;  %1502 = vrot.lane.b32.xlu0 %v1481_v8, %s2023_s16 }
 0xeb5   :  { %v1503_v9 = vpop.permute.xlu0 %1502 }
 0xeb6   :  { %1505 = vst.msk [vmem:[#allocation4] sm:$0xff] %vm624_vm5, %v1503_v9 }

</bundles_post_ra>
